<compile_context>
chip_gen: v7x
topology: tpu7x:2x2x1
jax: 0.10.0
libtpu: 0.0.40
codegen_flags: <defaults>
</compile_context>

<pallas_src>
import functools

import jax
import jax.numpy as jnp
from jax import lax
from jax.experimental import pallas as pl
from jax.experimental.pallas import tpu as pltpu

C_IN, C_OUT, KH, KW = 2, 2, 3, 3

_IDENTITY = lambda v: v


def _tile_bytes(rows, cols, dtype_bytes=4):
    """VMEM bytes of a (rows, cols) f32 plane after (8,128) tiling."""
    return (-(-rows // 8) * 8) * (-(-cols // 128) * 128) * dtype_bytes


def _choose_bn(n, per_img_vmem_bytes, *, target_bytes=4 << 20, min_steps=4):
    """Images per grid step.

    ~4 MiB of (padded) block data per step amortizes the ~0.35us per-step
    pipeline overhead while the double-buffered working set stays far below
    every chip's scoped-VMEM budget.  Keep >= min_steps grid iterations when
    the batch allows it so v7x (2 TCs sharing the "parallel" batch axis) still
    gets >= 2 pipelined steps per core and DMA overlaps compute.  Ragged last
    blocks are handled by the pl.cdiv grid, so no divisor search is needed."""
    bn = max(1, min(n, target_bytes // max(per_img_vmem_bytes, 1)))
    if n >= min_steps:
        bn = min(bn, max(1, n // min_steps))
    return bn


def _accumulate_flat(w_ref, b_ref, x_ref, w_dim):
    """Flat-lane 3x3 VALID conv + bias.

    Returns one (bn, H*W) f32 slab per output channel; flat position p = i*W + j
    holds conv(x)[i, j] + bias for every valid (i < h_out, j < w_out) and
    garbage elsewhere (those lanes are never stored)."""
    bn, _, hw = x_ref.shape

    # Hoist all SMEM scalar reads out of the loops (JAX does not CSE them).
    wv = [[[[w_ref[((co * C_IN + ci) * KH + kh) * KW + kw]
             for kw in range(KW)] for kh in range(KH)]
           for ci in range(C_IN)] for co in range(C_OUT)]
    acc = [jnp.full((bn, hw), b_ref[co], dtype=jnp.float32)
           for co in range(C_OUT)]

    for ci in range(C_IN):
        # One lane-dense slab per input channel, loaded ONCE and reused for all
        # 9 taps and both output channels.
        slab = x_ref[:, ci, :].astype(jnp.float32)          # (bn, H*W)
        for kh in range(KH):
            for kw in range(KW):
                shift = kh * w_dim + kw
                patch = slab if shift == 0 else pltpu.roll(slab, hw - shift, 1)
                for co in range(C_OUT):
                    acc[co] = acc[co] + patch * wv[co][ci][kh][kw]
    return acc


def _conv_kernel_residual(w_ref, b_ref, alpha_ref, x_ref, y_ref, o_ref, *,
                          h_out, w_out, w_dim, act):
    # w_ref: SMEM (18,) flattened OIHW weights; b_ref: SMEM (2,) bias;
    # alpha_ref: SMEM (1,) residual scale.
    acc = _accumulate_flat(w_ref, b_ref, x_ref, w_dim)
    alpha = alpha_ref[0]
    for co in range(C_OUT):
        for i in range(h_out):
            # Extract the valid w_out lanes of output row i from the flat slab.
            row = lax.slice_in_dim(acc[co], i * w_dim, i * w_dim + w_out, axis=1)
            res = y_ref[:, co, i, :].astype(jnp.float32)
            # Ordering matches the PyTorch module: conv+bias -> add(y, alpha) -> act.
            o_ref[:, co, i, :] = act(row + alpha * res).astype(o_ref.dtype)


def _conv_kernel_no_residual(w_ref, b_ref, x_ref, o_ref, *,
                             h_out, w_out, w_dim, act):
    acc = _accumulate_flat(w_ref, b_ref, x_ref, w_dim)
    for co in range(C_OUT):
        out_flat = act(acc[co])       # dense activation; garbage lanes never stored
        for i in range(h_out):
            o_ref[:, co, i, :] = lax.slice_in_dim(
                out_flat, i * w_dim, i * w_dim + w_out, axis=1).astype(o_ref.dtype)


def conv_bias_add_activation(x, w, b, y=None, *, alpha=1.0, act=None):
    """act(conv2d(x, w, b, VALID) + alpha * y), NCHW.

    x: (N, 2, H, W); w: (2, 2, 3, 3); b: (2,); y: (N, 2, H-2, W-2) or None.
    `act` must be an elementwise JAX-traceable function (default: identity,
    matching torch.nn.Identity in the module)."""
    if act is None:
        act = _IDENTITY
    n, c_in, h, w_dim = x.shape
    assert c_in == C_IN and w.shape == (C_OUT, C_IN, KH, KW) and b.shape == (C_OUT,)
    if h < KH or w_dim < KW:
        raise ValueError(f"spatial dims must be >= {KH}x{KW} for a VALID conv")
    h_out, w_out = h - KH + 1, w_dim - KW + 1
    hw = h * w_dim
    have_y = y is not None

    # Bitcast-level merge of the contiguous minor (H, W) dims -> lane-dense slabs.
    x_flat = x.reshape(n, C_IN, hw)

    # Per-image VMEM footprint with (8,128) tile padding of the last two dims.
    per_img_vmem = (_tile_bytes(C_IN, hw)
                    + (2 if have_y else 1) * C_OUT * _tile_bytes(h_out, w_out))
    bn = _choose_bn(n, per_img_vmem)
    grid = (pl.cdiv(n, bn),)

    w_flat = w.reshape(-1).astype(jnp.float32)
    b_f32 = b.astype(jnp.float32)

    in_specs = [pl.BlockSpec(memory_space=pltpu.MemorySpace.SMEM),   # conv weights
                pl.BlockSpec(memory_space=pltpu.MemorySpace.SMEM)]   # bias
    operands = [w_flat, b_f32]
    if have_y:
        in_specs.append(pl.BlockSpec(memory_space=pltpu.MemorySpace.SMEM))  # alpha
        operands.append(jnp.full((1,), alpha, dtype=jnp.float32))
    in_specs.append(pl.BlockSpec((bn, C_IN, hw), lambda i: (i, 0, 0)))
    operands.append(x_flat)
    if have_y:
        in_specs.append(pl.BlockSpec((bn, C_OUT, h_out, w_out),
                                     lambda i: (i, 0, 0, 0)))
        operands.append(y)

    kernel_fn = _conv_kernel_residual if have_y else _conv_kernel_no_residual
    kernel = functools.partial(kernel_fn, h_out=h_out, w_out=w_out,
                               w_dim=w_dim, act=act)

    flops = 2 * n * C_OUT * C_IN * KH * KW * h_out * w_out
    if have_y:
        flops += 2 * n * C_OUT * h_out * w_out
    bytes_accessed = 4 * (n * C_IN * hw
                          + (2 if have_y else 1) * n * C_OUT * h_out * w_out)

    # TODO(synk): on v7x (VALU-bound once HBM is 3.2 TB/s) the 36 taps/element
    # could be offloaded to the idle MXU as a banded matmul; not done here.
    return pl.pallas_call(
        kernel,
        out_shape=jax.ShapeDtypeStruct((n, C_OUT, h_out, w_out), x.dtype),
        grid_spec=pltpu.PrefetchScalarGridSpec(
            num_scalar_prefetch=0,
            grid=grid,
            in_specs=in_specs,
            out_specs=pl.BlockSpec((bn, C_OUT, h_out, w_out),
                                   lambda i: (i, 0, 0, 0))),
        compiler_params=pltpu.CompilerParams(
            dimension_semantics=("parallel",),
            vmem_limit_bytes=32 * 1024 * 1024),
        cost_estimate=pl.CostEstimate(flops=flops, transcendentals=0,
                                      bytes_accessed=bytes_accessed),
    )(*operands)


def _reference(x, w, b, y=None, alpha=1.0, act=None):
    if act is None:
        act = _IDENTITY
    out = lax.conv_general_dilated(
        x.astype(jnp.float32), w.astype(jnp.float32),
        window_strides=(1, 1), padding="VALID",
        dimension_numbers=("NCHW", "OIHW", "NCHW"))
    out = out + b.reshape(1, -1, 1, 1)
    if y is not None:
        out = out + alpha * y
    return act(out)


if __name__ == "__main__":
    key = jax.random.PRNGKey(0)
    kx, ky, kwt, kb = jax.random.split(key, 4)

    N, H, W = 2, 16, 16
    x = jax.random.normal(kx, (N, C_IN, H, W), dtype=jnp.float32)
    y = jax.random.normal(ky, (N, C_OUT, H - 2, W - 2), dtype=jnp.float32)

    # Deterministic "PyTorch-like" init: uniform(-k, k), k = 1/sqrt(fan_in)
    fan_in = C_IN * KH * KW
    bound = 1.0 / (fan_in ** 0.5)
    w = jax.random.uniform(kwt, (C_OUT, C_IN, KH, KW), jnp.float32, -bound, bound)
    b = jax.random.uniform(kb, (C_OUT,), jnp.float32, -bound, bound)

    # 1) residual path (y given, alpha != 1), Identity activation (module default)
    alpha = 0.5
    out = jax.block_until_ready(conv_bias_add_activation(x, w, b, y, alpha=alpha))
    ref = _reference(x, w, b, y, alpha)
    assert out.shape == (N, C_OUT, H - 2, W - 2), out.shape
    assert jnp.allclose(out, ref, atol=1e-5, rtol=1e-5), "mismatch (residual path)"

    # 2) y=None path (specialized kernel variant, no residual read)
    out2 = jax.block_until_ready(conv_bias_add_activation(x, w, b))
    ref2 = _reference(x, w, b)
    assert jnp.allclose(out2, ref2, atol=1e-5, rtol=1e-5), "mismatch (no-residual path)"

    # 3) non-identity activation: verify conv+bias -> +alpha*y -> act ordering
    out3 = jax.block_until_ready(
        conv_bias_add_activation(x, w, b, y, alpha=1.0, act=jax.nn.relu))
    ref3 = _reference(x, w, b, y, 1.0, act=jax.nn.relu)
    assert jnp.allclose(out3, ref3, atol=1e-5, rtol=1e-5), "mismatch (relu path)"

    print("KERNEL_OK")
</pallas_src>

<mosaic_0001>
module attributes {stable_mosaic.version = 11 : i64} {
  func.func @_conv_kernel_residual(%arg0: i32, %arg1: memref<36xf32, #tpu.memory_space<smem>>, %arg2: memref<2xf32, #tpu.memory_space<smem>>, %arg3: memref<1xf32, #tpu.memory_space<smem>>, %arg4: memref<2x2x256xf32, #tpu.memory_space<vmem>>, %arg5: memref<2x2x14x14xf32, #tpu.memory_space<vmem>>, %arg6: memref<2x2x14x14xf32, #tpu.memory_space<vmem>>) attributes {dimension_semantics = [#tpu.dimension_semantics<parallel>], iteration_bounds = array<i64: 1>, scalar_prefetch = 0 : i64, scratch_operands = 0 : i64, tpu.core_type = #tpu.core_type<tc>, window_params = [{transform_indices = @transform_0, window_bounds = array<i64: 36>}, {transform_indices = @transform_1, window_bounds = array<i64: 2>}, {transform_indices = @transform_2, window_bounds = array<i64: 1>}, {transform_indices = @transform_3, window_bounds = array<i64: 2, 2, 256>}, {transform_indices = @transform_4, window_bounds = array<i64: 2, 2, 14, 14>}, {transform_indices = @transform_5, window_bounds = array<i64: 2, 2, 14, 14>}]} {
    %c0 = arith.constant 0 : index
    %0 = memref.load %arg1[%c0] : memref<36xf32, #tpu.memory_space<smem>>
    %c1 = arith.constant 1 : index
    %1 = memref.load %arg1[%c1] : memref<36xf32, #tpu.memory_space<smem>>
    %c2 = arith.constant 2 : index
    %2 = memref.load %arg1[%c2] : memref<36xf32, #tpu.memory_space<smem>>
    %c3 = arith.constant 3 : index
    %3 = memref.load %arg1[%c3] : memref<36xf32, #tpu.memory_space<smem>>
    %c4 = arith.constant 4 : index
    %4 = memref.load %arg1[%c4] : memref<36xf32, #tpu.memory_space<smem>>
    %c5 = arith.constant 5 : index
    %5 = memref.load %arg1[%c5] : memref<36xf32, #tpu.memory_space<smem>>
    %c6 = arith.constant 6 : index
    %6 = memref.load %arg1[%c6] : memref<36xf32, #tpu.memory_space<smem>>
    %c7 = arith.constant 7 : index
    %7 = memref.load %arg1[%c7] : memref<36xf32, #tpu.memory_space<smem>>
    %c8 = arith.constant 8 : index
    %8 = memref.load %arg1[%c8] : memref<36xf32, #tpu.memory_space<smem>>
    %c9 = arith.constant 9 : index
    %9 = memref.load %arg1[%c9] : memref<36xf32, #tpu.memory_space<smem>>
    %c10 = arith.constant 10 : index
    %10 = memref.load %arg1[%c10] : memref<36xf32, #tpu.memory_space<smem>>
    %c11 = arith.constant 11 : index
    %11 = memref.load %arg1[%c11] : memref<36xf32, #tpu.memory_space<smem>>
    %c12 = arith.constant 12 : index
    %12 = memref.load %arg1[%c12] : memref<36xf32, #tpu.memory_space<smem>>
    %c13 = arith.constant 13 : index
    %13 = memref.load %arg1[%c13] : memref<36xf32, #tpu.memory_space<smem>>
    %c14 = arith.constant 14 : index
    %14 = memref.load %arg1[%c14] : memref<36xf32, #tpu.memory_space<smem>>
    %c15 = arith.constant 15 : index
    %15 = memref.load %arg1[%c15] : memref<36xf32, #tpu.memory_space<smem>>
    %c16 = arith.constant 16 : index
    %16 = memref.load %arg1[%c16] : memref<36xf32, #tpu.memory_space<smem>>
    %c17 = arith.constant 17 : index
    %17 = memref.load %arg1[%c17] : memref<36xf32, #tpu.memory_space<smem>>
    %c18 = arith.constant 18 : index
    %18 = memref.load %arg1[%c18] : memref<36xf32, #tpu.memory_space<smem>>
    %c19 = arith.constant 19 : index
    %19 = memref.load %arg1[%c19] : memref<36xf32, #tpu.memory_space<smem>>
    %c20 = arith.constant 20 : index
    %20 = memref.load %arg1[%c20] : memref<36xf32, #tpu.memory_space<smem>>
    %c21 = arith.constant 21 : index
    %21 = memref.load %arg1[%c21] : memref<36xf32, #tpu.memory_space<smem>>
    %c22 = arith.constant 22 : index
    %22 = memref.load %arg1[%c22] : memref<36xf32, #tpu.memory_space<smem>>
    %c23 = arith.constant 23 : index
    %23 = memref.load %arg1[%c23] : memref<36xf32, #tpu.memory_space<smem>>
    %c24 = arith.constant 24 : index
    %24 = memref.load %arg1[%c24] : memref<36xf32, #tpu.memory_space<smem>>
    %c25 = arith.constant 25 : index
    %25 = memref.load %arg1[%c25] : memref<36xf32, #tpu.memory_space<smem>>
    %c26 = arith.constant 26 : index
    %26 = memref.load %arg1[%c26] : memref<36xf32, #tpu.memory_space<smem>>
    %c27 = arith.constant 27 : index
    %27 = memref.load %arg1[%c27] : memref<36xf32, #tpu.memory_space<smem>>
    %c28 = arith.constant 28 : index
    %28 = memref.load %arg1[%c28] : memref<36xf32, #tpu.memory_space<smem>>
    %c29 = arith.constant 29 : index
    %29 = memref.load %arg1[%c29] : memref<36xf32, #tpu.memory_space<smem>>
    %c30 = arith.constant 30 : index
    %30 = memref.load %arg1[%c30] : memref<36xf32, #tpu.memory_space<smem>>
    %c31 = arith.constant 31 : index
    %31 = memref.load %arg1[%c31] : memref<36xf32, #tpu.memory_space<smem>>
    %c32 = arith.constant 32 : index
    %32 = memref.load %arg1[%c32] : memref<36xf32, #tpu.memory_space<smem>>
    %c33 = arith.constant 33 : index
    %33 = memref.load %arg1[%c33] : memref<36xf32, #tpu.memory_space<smem>>
    %c34 = arith.constant 34 : index
    %34 = memref.load %arg1[%c34] : memref<36xf32, #tpu.memory_space<smem>>
    %c35 = arith.constant 35 : index
    %35 = memref.load %arg1[%c35] : memref<36xf32, #tpu.memory_space<smem>>
    %c0_0 = arith.constant 0 : index
    %36 = memref.load %arg2[%c0_0] : memref<2xf32, #tpu.memory_space<smem>>
    %37 = vector.broadcast %36 : f32 to vector<2x256xf32>
    %c1_1 = arith.constant 1 : index
    %38 = memref.load %arg2[%c1_1] : memref<2xf32, #tpu.memory_space<smem>>
    %39 = vector.broadcast %38 : f32 to vector<2x256xf32>
    %c0_2 = arith.constant 0 : index
    %c0_3 = arith.constant 0 : index
    %c0_4 = arith.constant 0 : index
    %40 = vector.load %arg4[%c0_2, %c0_3, %c0_4] : memref<2x2x256xf32, #tpu.memory_space<vmem>>, vector<2x1x256xf32>
    %41 = vector.shape_cast %40 : vector<2x1x256xf32> to vector<2x256xf32>
    %42 = vector.broadcast %0 : f32 to vector<2x256xf32>
    %43 = arith.mulf %41, %42 : vector<2x256xf32>
    %44 = arith.addf %37, %43 : vector<2x256xf32>
    %45 = vector.broadcast %18 : f32 to vector<2x256xf32>
    %46 = arith.mulf %41, %45 : vector<2x256xf32>
    %47 = arith.addf %39, %46 : vector<2x256xf32>
    %c255_i32 = arith.constant 255 : i32
    %48 = tpu.dynamic_rotate %41 by %c255_i32 dim 1 : vector<2x256xf32>, i32 -> vector<2x256xf32>
    %49 = vector.broadcast %1 : f32 to vector<2x256xf32>
    %50 = arith.mulf %48, %49 : vector<2x256xf32>
    %51 = arith.addf %44, %50 : vector<2x256xf32>
    %52 = vector.broadcast %19 : f32 to vector<2x256xf32>
    %53 = arith.mulf %48, %52 : vector<2x256xf32>
    %54 = arith.addf %47, %53 : vector<2x256xf32>
    %c254_i32 = arith.constant 254 : i32
    %55 = tpu.dynamic_rotate %41 by %c254_i32 dim 1 : vector<2x256xf32>, i32 -> vector<2x256xf32>
    %56 = vector.broadcast %2 : f32 to vector<2x256xf32>
    %57 = arith.mulf %55, %56 : vector<2x256xf32>
    %58 = arith.addf %51, %57 : vector<2x256xf32>
    %59 = vector.broadcast %20 : f32 to vector<2x256xf32>
    %60 = arith.mulf %55, %59 : vector<2x256xf32>
    %61 = arith.addf %54, %60 : vector<2x256xf32>
    %c240_i32 = arith.constant 240 : i32
    %62 = tpu.dynamic_rotate %41 by %c240_i32 dim 1 : vector<2x256xf32>, i32 -> vector<2x256xf32>
    %63 = vector.broadcast %3 : f32 to vector<2x256xf32>
    %64 = arith.mulf %62, %63 : vector<2x256xf32>
    %65 = arith.addf %58, %64 : vector<2x256xf32>
    %66 = vector.broadcast %21 : f32 to vector<2x256xf32>
    %67 = arith.mulf %62, %66 : vector<2x256xf32>
    %68 = arith.addf %61, %67 : vector<2x256xf32>
    %c239_i32 = arith.constant 239 : i32
    %69 = tpu.dynamic_rotate %41 by %c239_i32 dim 1 : vector<2x256xf32>, i32 -> vector<2x256xf32>
    %70 = vector.broadcast %4 : f32 to vector<2x256xf32>
    %71 = arith.mulf %69, %70 : vector<2x256xf32>
    %72 = arith.addf %65, %71 : vector<2x256xf32>
    %73 = vector.broadcast %22 : f32 to vector<2x256xf32>
    %74 = arith.mulf %69, %73 : vector<2x256xf32>
    %75 = arith.addf %68, %74 : vector<2x256xf32>
    %c238_i32 = arith.constant 238 : i32
    %76 = tpu.dynamic_rotate %41 by %c238_i32 dim 1 : vector<2x256xf32>, i32 -> vector<2x256xf32>
    %77 = vector.broadcast %5 : f32 to vector<2x256xf32>
    %78 = arith.mulf %76, %77 : vector<2x256xf32>
    %79 = arith.addf %72, %78 : vector<2x256xf32>
    %80 = vector.broadcast %23 : f32 to vector<2x256xf32>
    %81 = arith.mulf %76, %80 : vector<2x256xf32>
    %82 = arith.addf %75, %81 : vector<2x256xf32>
    %c224_i32 = arith.constant 224 : i32
    %83 = tpu.dynamic_rotate %41 by %c224_i32 dim 1 : vector<2x256xf32>, i32 -> vector<2x256xf32>
    %84 = vector.broadcast %6 : f32 to vector<2x256xf32>
    %85 = arith.mulf %83, %84 : vector<2x256xf32>
    %86 = arith.addf %79, %85 : vector<2x256xf32>
    %87 = vector.broadcast %24 : f32 to vector<2x256xf32>
    %88 = arith.mulf %83, %87 : vector<2x256xf32>
    %89 = arith.addf %82, %88 : vector<2x256xf32>
    %c223_i32 = arith.constant 223 : i32
    %90 = tpu.dynamic_rotate %41 by %c223_i32 dim 1 : vector<2x256xf32>, i32 -> vector<2x256xf32>
    %91 = vector.broadcast %7 : f32 to vector<2x256xf32>
    %92 = arith.mulf %90, %91 : vector<2x256xf32>
    %93 = arith.addf %86, %92 : vector<2x256xf32>
    %94 = vector.broadcast %25 : f32 to vector<2x256xf32>
    %95 = arith.mulf %90, %94 : vector<2x256xf32>
    %96 = arith.addf %89, %95 : vector<2x256xf32>
    %c222_i32 = arith.constant 222 : i32
    %97 = tpu.dynamic_rotate %41 by %c222_i32 dim 1 : vector<2x256xf32>, i32 -> vector<2x256xf32>
    %98 = vector.broadcast %8 : f32 to vector<2x256xf32>
    %99 = arith.mulf %97, %98 : vector<2x256xf32>
    %100 = arith.addf %93, %99 : vector<2x256xf32>
    %101 = vector.broadcast %26 : f32 to vector<2x256xf32>
    %102 = arith.mulf %97, %101 : vector<2x256xf32>
    %103 = arith.addf %96, %102 : vector<2x256xf32>
    %c0_5 = arith.constant 0 : index
    %c1_6 = arith.constant 1 : index
    %c0_7 = arith.constant 0 : index
    %104 = vector.load %arg4[%c0_5, %c1_6, %c0_7] : memref<2x2x256xf32, #tpu.memory_space<vmem>>, vector<2x1x256xf32>
    %105 = vector.shape_cast %104 : vector<2x1x256xf32> to vector<2x256xf32>
    %106 = vector.broadcast %9 : f32 to vector<2x256xf32>
    %107 = arith.mulf %105, %106 : vector<2x256xf32>
    %108 = arith.addf %100, %107 : vector<2x256xf32>
    %109 = vector.broadcast %27 : f32 to vector<2x256xf32>
    %110 = arith.mulf %105, %109 : vector<2x256xf32>
    %111 = arith.addf %103, %110 : vector<2x256xf32>
    %c255_i32_8 = arith.constant 255 : i32
    %112 = tpu.dynamic_rotate %105 by %c255_i32_8 dim 1 : vector<2x256xf32>, i32 -> vector<2x256xf32>
    %113 = vector.broadcast %10 : f32 to vector<2x256xf32>
    %114 = arith.mulf %112, %113 : vector<2x256xf32>
    %115 = arith.addf %108, %114 : vector<2x256xf32>
    %116 = vector.broadcast %28 : f32 to vector<2x256xf32>
    %117 = arith.mulf %112, %116 : vector<2x256xf32>
    %118 = arith.addf %111, %117 : vector<2x256xf32>
    %c254_i32_9 = arith.constant 254 : i32
    %119 = tpu.dynamic_rotate %105 by %c254_i32_9 dim 1 : vector<2x256xf32>, i32 -> vector<2x256xf32>
    %120 = vector.broadcast %11 : f32 to vector<2x256xf32>
    %121 = arith.mulf %119, %120 : vector<2x256xf32>
    %122 = arith.addf %115, %121 : vector<2x256xf32>
    %123 = vector.broadcast %29 : f32 to vector<2x256xf32>
    %124 = arith.mulf %119, %123 : vector<2x256xf32>
    %125 = arith.addf %118, %124 : vector<2x256xf32>
    %c240_i32_10 = arith.constant 240 : i32
    %126 = tpu.dynamic_rotate %105 by %c240_i32_10 dim 1 : vector<2x256xf32>, i32 -> vector<2x256xf32>
    %127 = vector.broadcast %12 : f32 to vector<2x256xf32>
    %128 = arith.mulf %126, %127 : vector<2x256xf32>
    %129 = arith.addf %122, %128 : vector<2x256xf32>
    %130 = vector.broadcast %30 : f32 to vector<2x256xf32>
    %131 = arith.mulf %126, %130 : vector<2x256xf32>
    %132 = arith.addf %125, %131 : vector<2x256xf32>
    %c239_i32_11 = arith.constant 239 : i32
    %133 = tpu.dynamic_rotate %105 by %c239_i32_11 dim 1 : vector<2x256xf32>, i32 -> vector<2x256xf32>
    %134 = vector.broadcast %13 : f32 to vector<2x256xf32>
    %135 = arith.mulf %133, %134 : vector<2x256xf32>
    %136 = arith.addf %129, %135 : vector<2x256xf32>
    %137 = vector.broadcast %31 : f32 to vector<2x256xf32>
    %138 = arith.mulf %133, %137 : vector<2x256xf32>
    %139 = arith.addf %132, %138 : vector<2x256xf32>
    %c238_i32_12 = arith.constant 238 : i32
    %140 = tpu.dynamic_rotate %105 by %c238_i32_12 dim 1 : vector<2x256xf32>, i32 -> vector<2x256xf32>
    %141 = vector.broadcast %14 : f32 to vector<2x256xf32>
    %142 = arith.mulf %140, %141 : vector<2x256xf32>
    %143 = arith.addf %136, %142 : vector<2x256xf32>
    %144 = vector.broadcast %32 : f32 to vector<2x256xf32>
    %145 = arith.mulf %140, %144 : vector<2x256xf32>
    %146 = arith.addf %139, %145 : vector<2x256xf32>
    %c224_i32_13 = arith.constant 224 : i32
    %147 = tpu.dynamic_rotate %105 by %c224_i32_13 dim 1 : vector<2x256xf32>, i32 -> vector<2x256xf32>
    %148 = vector.broadcast %15 : f32 to vector<2x256xf32>
    %149 = arith.mulf %147, %148 : vector<2x256xf32>
    %150 = arith.addf %143, %149 : vector<2x256xf32>
    %151 = vector.broadcast %33 : f32 to vector<2x256xf32>
    %152 = arith.mulf %147, %151 : vector<2x256xf32>
    %153 = arith.addf %146, %152 : vector<2x256xf32>
    %c223_i32_14 = arith.constant 223 : i32
    %154 = tpu.dynamic_rotate %105 by %c223_i32_14 dim 1 : vector<2x256xf32>, i32 -> vector<2x256xf32>
    %155 = vector.broadcast %16 : f32 to vector<2x256xf32>
    %156 = arith.mulf %154, %155 : vector<2x256xf32>
    %157 = arith.addf %150, %156 : vector<2x256xf32>
    %158 = vector.broadcast %34 : f32 to vector<2x256xf32>
    %159 = arith.mulf %154, %158 : vector<2x256xf32>
    %160 = arith.addf %153, %159 : vector<2x256xf32>
    %c222_i32_15 = arith.constant 222 : i32
    %161 = tpu.dynamic_rotate %105 by %c222_i32_15 dim 1 : vector<2x256xf32>, i32 -> vector<2x256xf32>
    %162 = vector.broadcast %17 : f32 to vector<2x256xf32>
    %163 = arith.mulf %161, %162 : vector<2x256xf32>
    %164 = arith.addf %157, %163 : vector<2x256xf32>
    %165 = vector.broadcast %35 : f32 to vector<2x256xf32>
    %166 = arith.mulf %161, %165 : vector<2x256xf32>
    %167 = arith.addf %160, %166 : vector<2x256xf32>
    %c0_16 = arith.constant 0 : index
    %168 = memref.load %arg3[%c0_16] : memref<1xf32, #tpu.memory_space<smem>>
    %169 = vector.extract_strided_slice %164 {offsets = [0, 0], sizes = [2, 14], strides = [1, 1]} : vector<2x256xf32> to vector<2x14xf32>
    %c0_17 = arith.constant 0 : index
    %c0_18 = arith.constant 0 : index
    %c0_19 = arith.constant 0 : index
    %c0_20 = arith.constant 0 : index
    %170 = vector.load %arg5[%c0_17, %c0_18, %c0_19, %c0_20] : memref<2x2x14x14xf32, #tpu.memory_space<vmem>>, vector<2x1x1x14xf32>
    %171 = vector.shape_cast %170 : vector<2x1x1x14xf32> to vector<2x14xf32>
    %172 = vector.broadcast %168 : f32 to vector<2x14xf32>
    %173 = arith.mulf %172, %171 : vector<2x14xf32>
    %174 = arith.addf %169, %173 : vector<2x14xf32>
    %c0_21 = arith.constant 0 : index
    %c0_22 = arith.constant 0 : index
    %c0_23 = arith.constant 0 : index
    %c0_24 = arith.constant 0 : index
    %175 = vector.load %arg6[%c0_21, %c0_22, %c0_23, %c0_24] : memref<2x2x14x14xf32, #tpu.memory_space<vmem>>, vector<2x1x1x14xf32>
    %176 = vector.shape_cast %175 : vector<2x1x1x14xf32> to vector<2x14xf32>
    %177 = vector.shape_cast %174 : vector<2x14xf32> to vector<2x1x1x14xf32>
    tpu.vector_store %arg6[%c0_21, %c0_22, %c0_23, %c0_24], %177 {strides = array<i32>} : memref<2x2x14x14xf32, #tpu.memory_space<vmem>>, vector<2x1x1x14xf32>,
    %178 = vector.extract_strided_slice %164 {offsets = [0, 16], sizes = [2, 14], strides = [1, 1]} : vector<2x256xf32> to vector<2x14xf32>
    %c0_25 = arith.constant 0 : index
    %c0_26 = arith.constant 0 : index
    %c1_27 = arith.constant 1 : index
    %c0_28 = arith.constant 0 : index
    %179 = vector.load %arg5[%c0_25, %c0_26, %c1_27, %c0_28] : memref<2x2x14x14xf32, #tpu.memory_space<vmem>>, vector<2x1x1x14xf32>
    %180 = vector.shape_cast %179 : vector<2x1x1x14xf32> to vector<2x14xf32>
    %181 = vector.broadcast %168 : f32 to vector<2x14xf32>
    %182 = arith.mulf %181, %180 : vector<2x14xf32>
    %183 = arith.addf %178, %182 : vector<2x14xf32>
    %c0_29 = arith.constant 0 : index
    %c0_30 = arith.constant 0 : index
    %c1_31 = arith.constant 1 : index
    %c0_32 = arith.constant 0 : index
    %184 = vector.load %arg6[%c0_29, %c0_30, %c1_31, %c0_32] : memref<2x2x14x14xf32, #tpu.memory_space<vmem>>, vector<2x1x1x14xf32>
    %185 = vector.shape_cast %184 : vector<2x1x1x14xf32> to vector<2x14xf32>
    %186 = vector.shape_cast %183 : vector<2x14xf32> to vector<2x1x1x14xf32>
    tpu.vector_store %arg6[%c0_29, %c0_30, %c1_31, %c0_32], %186 {strides = array<i32>} : memref<2x2x14x14xf32, #tpu.memory_space<vmem>>, vector<2x1x1x14xf32>,
    %187 = vector.extract_strided_slice %164 {offsets = [0, 32], sizes = [2, 14], strides = [1, 1]} : vector<2x256xf32> to vector<2x14xf32>
    %c0_33 = arith.constant 0 : index
    %c0_34 = arith.constant 0 : index
    %c2_35 = arith.constant 2 : index
    %c0_36 = arith.constant 0 : index
    %188 = vector.load %arg5[%c0_33, %c0_34, %c2_35, %c0_36] : memref<2x2x14x14xf32, #tpu.memory_space<vmem>>, vector<2x1x1x14xf32>
    %189 = vector.shape_cast %188 : vector<2x1x1x14xf32> to vector<2x14xf32>
    %190 = vector.broadcast %168 : f32 to vector<2x14xf32>
    %191 = arith.mulf %190, %189 : vector<2x14xf32>
    %192 = arith.addf %187, %191 : vector<2x14xf32>
    %c0_37 = arith.constant 0 : index
    %c0_38 = arith.constant 0 : index
    %c2_39 = arith.constant 2 : index
    %c0_40 = arith.constant 0 : index
    %193 = vector.load %arg6[%c0_37, %c0_38, %c2_39, %c0_40] : memref<2x2x14x14xf32, #tpu.memory_space<vmem>>, vector<2x1x1x14xf32>
    %194 = vector.shape_cast %193 : vector<2x1x1x14xf32> to vector<2x14xf32>
    %195 = vector.shape_cast %192 : vector<2x14xf32> to vector<2x1x1x14xf32>
    tpu.vector_store %arg6[%c0_37, %c0_38, %c2_39, %c0_40], %195 {strides = array<i32>} : memref<2x2x14x14xf32, #tpu.memory_space<vmem>>, vector<2x1x1x14xf32>,
    %196 = vector.extract_strided_slice %164 {offsets = [0, 48], sizes = [2, 14], strides = [1, 1]} : vector<2x256xf32> to vector<2x14xf32>
    %c0_41 = arith.constant 0 : index
    %c0_42 = arith.constant 0 : index
    %c3_43 = arith.constant 3 : index
    %c0_44 = arith.constant 0 : index
    %197 = vector.load %arg5[%c0_41, %c0_42, %c3_43, %c0_44] : memref<2x2x14x14xf32, #tpu.memory_space<vmem>>, vector<2x1x1x14xf32>
    %198 = vector.shape_cast %197 : vector<2x1x1x14xf32> to vector<2x14xf32>
    %199 = vector.broadcast %168 : f32 to vector<2x14xf32>
    %200 = arith.mulf %199, %198 : vector<2x14xf32>
    %201 = arith.addf %196, %200 : vector<2x14xf32>
    %c0_45 = arith.constant 0 : index
    %c0_46 = arith.constant 0 : index
    %c3_47 = arith.constant 3 : index
    %c0_48 = arith.constant 0 : index
    %202 = vector.load %arg6[%c0_45, %c0_46, %c3_47, %c0_48] : memref<2x2x14x14xf32, #tpu.memory_space<vmem>>, vector<2x1x1x14xf32>
    %203 = vector.shape_cast %202 : vector<2x1x1x14xf32> to vector<2x14xf32>
    %204 = vector.shape_cast %201 : vector<2x14xf32> to vector<2x1x1x14xf32>
    tpu.vector_store %arg6[%c0_45, %c0_46, %c3_47, %c0_48], %204 {strides = array<i32>} : memref<2x2x14x14xf32, #tpu.memory_space<vmem>>, vector<2x1x1x14xf32>,
    %205 = vector.extract_strided_slice %164 {offsets = [0, 64], sizes = [2, 14], strides = [1, 1]} : vector<2x256xf32> to vector<2x14xf32>
    %c0_49 = arith.constant 0 : index
    %c0_50 = arith.constant 0 : index
    %c4_51 = arith.constant 4 : index
    %c0_52 = arith.constant 0 : index
    %206 = vector.load %arg5[%c0_49, %c0_50, %c4_51, %c0_52] : memref<2x2x14x14xf32, #tpu.memory_space<vmem>>, vector<2x1x1x14xf32>
    %207 = vector.shape_cast %206 : vector<2x1x1x14xf32> to vector<2x14xf32>
    %208 = vector.broadcast %168 : f32 to vector<2x14xf32>
    %209 = arith.mulf %208, %207 : vector<2x14xf32>
    %210 = arith.addf %205, %209 : vector<2x14xf32>
    %c0_53 = arith.constant 0 : index
    %c0_54 = arith.constant 0 : index
    %c4_55 = arith.constant 4 : index
    %c0_56 = arith.constant 0 : index
    %211 = vector.load %arg6[%c0_53, %c0_54, %c4_55, %c0_56] : memref<2x2x14x14xf32, #tpu.memory_space<vmem>>, vector<2x1x1x14xf32>
    %212 = vector.shape_cast %211 : vector<2x1x1x14xf32> to vector<2x14xf32>
    %213 = vector.shape_cast %210 : vector<2x14xf32> to vector<2x1x1x14xf32>
    tpu.vector_store %arg6[%c0_53, %c0_54, %c4_55, %c0_56], %213 {strides = array<i32>} : memref<2x2x14x14xf32, #tpu.memory_space<vmem>>, vector<2x1x1x14xf32>,
    %214 = vector.extract_strided_slice %164 {offsets = [0, 80], sizes = [2, 14], strides = [1, 1]} : vector<2x256xf32> to vector<2x14xf32>
    %c0_57 = arith.constant 0 : index
    %c0_58 = arith.constant 0 : index
    %c5_59 = arith.constant 5 : index
    %c0_60 = arith.constant 0 : index
    %215 = vector.load %arg5[%c0_57, %c0_58, %c5_59, %c0_60] : memref<2x2x14x14xf32, #tpu.memory_space<vmem>>, vector<2x1x1x14xf32>
    %216 = vector.shape_cast %215 : vector<2x1x1x14xf32> to vector<2x14xf32>
    %217 = vector.broadcast %168 : f32 to vector<2x14xf32>
    %218 = arith.mulf %217, %216 : vector<2x14xf32>
    %219 = arith.addf %214, %218 : vector<2x14xf32>
    %c0_61 = arith.constant 0 : index
    %c0_62 = arith.constant 0 : index
    %c5_63 = arith.constant 5 : index
    %c0_64 = arith.constant 0 : index
    %220 = vector.load %arg6[%c0_61, %c0_62, %c5_63, %c0_64] : memref<2x2x14x14xf32, #tpu.memory_space<vmem>>, vector<2x1x1x14xf32>
    %221 = vector.shape_cast %220 : vector<2x1x1x14xf32> to vector<2x14xf32>
    %222 = vector.shape_cast %219 : vector<2x14xf32> to vector<2x1x1x14xf32>
    tpu.vector_store %arg6[%c0_61, %c0_62, %c5_63, %c0_64], %222 {strides = array<i32>} : memref<2x2x14x14xf32, #tpu.memory_space<vmem>>, vector<2x1x1x14xf32>,
    %223 = vector.extract_strided_slice %164 {offsets = [0, 96], sizes = [2, 14], strides = [1, 1]} : vector<2x256xf32> to vector<2x14xf32>
    %c0_65 = arith.constant 0 : index
    %c0_66 = arith.constant 0 : index
    %c6_67 = arith.constant 6 : index
    %c0_68 = arith.constant 0 : index
    %224 = vector.load %arg5[%c0_65, %c0_66, %c6_67, %c0_68] : memref<2x2x14x14xf32, #tpu.memory_space<vmem>>, vector<2x1x1x14xf32>
    %225 = vector.shape_cast %224 : vector<2x1x1x14xf32> to vector<2x14xf32>
    %226 = vector.broadcast %168 : f32 to vector<2x14xf32>
    %227 = arith.mulf %226, %225 : vector<2x14xf32>
    %228 = arith.addf %223, %227 : vector<2x14xf32>
    %c0_69 = arith.constant 0 : index
    %c0_70 = arith.constant 0 : index
    %c6_71 = arith.constant 6 : index
    %c0_72 = arith.constant 0 : index
    %229 = vector.load %arg6[%c0_69, %c0_70, %c6_71, %c0_72] : memref<2x2x14x14xf32, #tpu.memory_space<vmem>>, vector<2x1x1x14xf32>
    %230 = vector.shape_cast %229 : vector<2x1x1x14xf32> to vector<2x14xf32>
    %231 = vector.shape_cast %228 : vector<2x14xf32> to vector<2x1x1x14xf32>
    tpu.vector_store %arg6[%c0_69, %c0_70, %c6_71, %c0_72], %231 {strides = array<i32>} : memref<2x2x14x14xf32, #tpu.memory_space<vmem>>, vector<2x1x1x14xf32>,
    %232 = vector.extract_strided_slice %164 {offsets = [0, 112], sizes = [2, 14], strides = [1, 1]} : vector<2x256xf32> to vector<2x14xf32>
    %c0_73 = arith.constant 0 : index
    %c0_74 = arith.constant 0 : index
    %c7_75 = arith.constant 7 : index
    %c0_76 = arith.constant 0 : index
    %233 = vector.load %arg5[%c0_73, %c0_74, %c7_75, %c0_76] : memref<2x2x14x14xf32, #tpu.memory_space<vmem>>, vector<2x1x1x14xf32>
    %234 = vector.shape_cast %233 : vector<2x1x1x14xf32> to vector<2x14xf32>
    %235 = vector.broadcast %168 : f32 to vector<2x14xf32>
    %236 = arith.mulf %235, %234 : vector<2x14xf32>
    %237 = arith.addf %232, %236 : vector<2x14xf32>
    %c0_77 = arith.constant 0 : index
    %c0_78 = arith.constant 0 : index
    %c7_79 = arith.constant 7 : index
    %c0_80 = arith.constant 0 : index
    %238 = vector.load %arg6[%c0_77, %c0_78, %c7_79, %c0_80] : memref<2x2x14x14xf32, #tpu.memory_space<vmem>>, vector<2x1x1x14xf32>
    %239 = vector.shape_cast %238 : vector<2x1x1x14xf32> to vector<2x14xf32>
    %240 = vector.shape_cast %237 : vector<2x14xf32> to vector<2x1x1x14xf32>
    tpu.vector_store %arg6[%c0_77, %c0_78, %c7_79, %c0_80], %240 {strides = array<i32>} : memref<2x2x14x14xf32, #tpu.memory_space<vmem>>, vector<2x1x1x14xf32>,
    %241 = vector.extract_strided_slice %164 {offsets = [0, 128], sizes = [2, 14], strides = [1, 1]} : vector<2x256xf32> to vector<2x14xf32>
    %c0_81 = arith.constant 0 : index
    %c0_82 = arith.constant 0 : index
    %c8_83 = arith.constant 8 : index
    %c0_84 = arith.constant 0 : index
    %242 = vector.load %arg5[%c0_81, %c0_82, %c8_83, %c0_84] : memref<2x2x14x14xf32, #tpu.memory_space<vmem>>, vector<2x1x1x14xf32>
    %243 = vector.shape_cast %242 : vector<2x1x1x14xf32> to vector<2x14xf32>
    %244 = vector.broadcast %168 : f32 to vector<2x14xf32>
    %245 = arith.mulf %244, %243 : vector<2x14xf32>
    %246 = arith.addf %241, %245 : vector<2x14xf32>
    %c0_85 = arith.constant 0 : index
    %c0_86 = arith.constant 0 : index
    %c8_87 = arith.constant 8 : index
    %c0_88 = arith.constant 0 : index
    %247 = vector.load %arg6[%c0_85, %c0_86, %c8_87, %c0_88] : memref<2x2x14x14xf32, #tpu.memory_space<vmem>>, vector<2x1x1x14xf32>
    %248 = vector.shape_cast %247 : vector<2x1x1x14xf32> to vector<2x14xf32>
    %249 = vector.shape_cast %246 : vector<2x14xf32> to vector<2x1x1x14xf32>
    tpu.vector_store %arg6[%c0_85, %c0_86, %c8_87, %c0_88], %249 {strides = array<i32>} : memref<2x2x14x14xf32, #tpu.memory_space<vmem>>, vector<2x1x1x14xf32>,
    %250 = vector.extract_strided_slice %164 {offsets = [0, 144], sizes = [2, 14], strides = [1, 1]} : vector<2x256xf32> to vector<2x14xf32>
    %c0_89 = arith.constant 0 : index
    %c0_90 = arith.constant 0 : index
    %c9_91 = arith.constant 9 : index
    %c0_92 = arith.constant 0 : index
    %251 = vector.load %arg5[%c0_89, %c0_90, %c9_91, %c0_92] : memref<2x2x14x14xf32, #tpu.memory_space<vmem>>, vector<2x1x1x14xf32>
    %252 = vector.shape_cast %251 : vector<2x1x1x14xf32> to vector<2x14xf32>
    %253 = vector.broadcast %168 : f32 to vector<2x14xf32>
    %254 = arith.mulf %253, %252 : vector<2x14xf32>
    %255 = arith.addf %250, %254 : vector<2x14xf32>
    %c0_93 = arith.constant 0 : index
    %c0_94 = arith.constant 0 : index
    %c9_95 = arith.constant 9 : index
    %c0_96 = arith.constant 0 : index
    %256 = vector.load %arg6[%c0_93, %c0_94, %c9_95, %c0_96] : memref<2x2x14x14xf32, #tpu.memory_space<vmem>>, vector<2x1x1x14xf32>
    %257 = vector.shape_cast %256 : vector<2x1x1x14xf32> to vector<2x14xf32>
    %258 = vector.shape_cast %255 : vector<2x14xf32> to vector<2x1x1x14xf32>
    tpu.vector_store %arg6[%c0_93, %c0_94, %c9_95, %c0_96], %258 {strides = array<i32>} : memref<2x2x14x14xf32, #tpu.memory_space<vmem>>, vector<2x1x1x14xf32>,
    %259 = vector.extract_strided_slice %164 {offsets = [0, 160], sizes = [2, 14], strides = [1, 1]} : vector<2x256xf32> to vector<2x14xf32>
    %c0_97 = arith.constant 0 : index
    %c0_98 = arith.constant 0 : index
    %c10_99 = arith.constant 10 : index
    %c0_100 = arith.constant 0 : index
    %260 = vector.load %arg5[%c0_97, %c0_98, %c10_99, %c0_100] : memref<2x2x14x14xf32, #tpu.memory_space<vmem>>, vector<2x1x1x14xf32>
    %261 = vector.shape_cast %260 : vector<2x1x1x14xf32> to vector<2x14xf32>
    %262 = vector.broadcast %168 : f32 to vector<2x14xf32>
    %263 = arith.mulf %262, %261 : vector<2x14xf32>
    %264 = arith.addf %259, %263 : vector<2x14xf32>
    %c0_101 = arith.constant 0 : index
    %c0_102 = arith.constant 0 : index
    %c10_103 = arith.constant 10 : index
    %c0_104 = arith.constant 0 : index
    %265 = vector.load %arg6[%c0_101, %c0_102, %c10_103, %c0_104] : memref<2x2x14x14xf32, #tpu.memory_space<vmem>>, vector<2x1x1x14xf32>
    %266 = vector.shape_cast %265 : vector<2x1x1x14xf32> to vector<2x14xf32>
    %267 = vector.shape_cast %264 : vector<2x14xf32> to vector<2x1x1x14xf32>
    tpu.vector_store %arg6[%c0_101, %c0_102, %c10_103, %c0_104], %267 {strides = array<i32>} : memref<2x2x14x14xf32, #tpu.memory_space<vmem>>, vector<2x1x1x14xf32>,
    %268 = vector.extract_strided_slice %164 {offsets = [0, 176], sizes = [2, 14], strides = [1, 1]} : vector<2x256xf32> to vector<2x14xf32>
    %c0_105 = arith.constant 0 : index
    %c0_106 = arith.constant 0 : index
    %c11_107 = arith.constant 11 : index
    %c0_108 = arith.constant 0 : index
    %269 = vector.load %arg5[%c0_105, %c0_106, %c11_107, %c0_108] : memref<2x2x14x14xf32, #tpu.memory_space<vmem>>, vector<2x1x1x14xf32>
    %270 = vector.shape_cast %269 : vector<2x1x1x14xf32> to vector<2x14xf32>
    %271 = vector.broadcast %168 : f32 to vector<2x14xf32>
    %272 = arith.mulf %271, %270 : vector<2x14xf32>
    %273 = arith.addf %268, %272 : vector<2x14xf32>
    %c0_109 = arith.constant 0 : index
    %c0_110 = arith.constant 0 : index
    %c11_111 = arith.constant 11 : index
    %c0_112 = arith.constant 0 : index
    %274 = vector.load %arg6[%c0_109, %c0_110, %c11_111, %c0_112] : memref<2x2x14x14xf32, #tpu.memory_space<vmem>>, vector<2x1x1x14xf32>
    %275 = vector.shape_cast %274 : vector<2x1x1x14xf32> to vector<2x14xf32>
    %276 = vector.shape_cast %273 : vector<2x14xf32> to vector<2x1x1x14xf32>
    tpu.vector_store %arg6[%c0_109, %c0_110, %c11_111, %c0_112], %276 {strides = array<i32>} : memref<2x2x14x14xf32, #tpu.memory_space<vmem>>, vector<2x1x1x14xf32>,
    %277 = vector.extract_strided_slice %164 {offsets = [0, 192], sizes = [2, 14], strides = [1, 1]} : vector<2x256xf32> to vector<2x14xf32>
    %c0_113 = arith.constant 0 : index
    %c0_114 = arith.constant 0 : index
    %c12_115 = arith.constant 12 : index
    %c0_116 = arith.constant 0 : index
    %278 = vector.load %arg5[%c0_113, %c0_114, %c12_115, %c0_116] : memref<2x2x14x14xf32, #tpu.memory_space<vmem>>, vector<2x1x1x14xf32>
    %279 = vector.shape_cast %278 : vector<2x1x1x14xf32> to vector<2x14xf32>
    %280 = vector.broadcast %168 : f32 to vector<2x14xf32>
    %281 = arith.mulf %280, %279 : vector<2x14xf32>
    %282 = arith.addf %277, %281 : vector<2x14xf32>
    %c0_117 = arith.constant 0 : index
    %c0_118 = arith.constant 0 : index
    %c12_119 = arith.constant 12 : index
    %c0_120 = arith.constant 0 : index
    %283 = vector.load %arg6[%c0_117, %c0_118, %c12_119, %c0_120] : memref<2x2x14x14xf32, #tpu.memory_space<vmem>>, vector<2x1x1x14xf32>
    %284 = vector.shape_cast %283 : vector<2x1x1x14xf32> to vector<2x14xf32>
    %285 = vector.shape_cast %282 : vector<2x14xf32> to vector<2x1x1x14xf32>
    tpu.vector_store %arg6[%c0_117, %c0_118, %c12_119, %c0_120], %285 {strides = array<i32>} : memref<2x2x14x14xf32, #tpu.memory_space<vmem>>, vector<2x1x1x14xf32>,
    %286 = vector.extract_strided_slice %164 {offsets = [0, 208], sizes = [2, 14], strides = [1, 1]} : vector<2x256xf32> to vector<2x14xf32>
    %c0_121 = arith.constant 0 : index
    %c0_122 = arith.constant 0 : index
    %c13_123 = arith.constant 13 : index
    %c0_124 = arith.constant 0 : index
    %287 = vector.load %arg5[%c0_121, %c0_122, %c13_123, %c0_124] : memref<2x2x14x14xf32, #tpu.memory_space<vmem>>, vector<2x1x1x14xf32>
    %288 = vector.shape_cast %287 : vector<2x1x1x14xf32> to vector<2x14xf32>
    %289 = vector.broadcast %168 : f32 to vector<2x14xf32>
    %290 = arith.mulf %289, %288 : vector<2x14xf32>
    %291 = arith.addf %286, %290 : vector<2x14xf32>
    %c0_125 = arith.constant 0 : index
    %c0_126 = arith.constant 0 : index
    %c13_127 = arith.constant 13 : index
    %c0_128 = arith.constant 0 : index
    %292 = vector.load %arg6[%c0_125, %c0_126, %c13_127, %c0_128] : memref<2x2x14x14xf32, #tpu.memory_space<vmem>>, vector<2x1x1x14xf32>
    %293 = vector.shape_cast %292 : vector<2x1x1x14xf32> to vector<2x14xf32>
    %294 = vector.shape_cast %291 : vector<2x14xf32> to vector<2x1x1x14xf32>
    tpu.vector_store %arg6[%c0_125, %c0_126, %c13_127, %c0_128], %294 {strides = array<i32>} : memref<2x2x14x14xf32, #tpu.memory_space<vmem>>, vector<2x1x1x14xf32>,
    %295 = vector.extract_strided_slice %167 {offsets = [0, 0], sizes = [2, 14], strides = [1, 1]} : vector<2x256xf32> to vector<2x14xf32>
    %c0_129 = arith.constant 0 : index
    %c1_130 = arith.constant 1 : index
    %c0_131 = arith.constant 0 : index
    %c0_132 = arith.constant 0 : index
    %296 = vector.load %arg5[%c0_129, %c1_130, %c0_131, %c0_132] : memref<2x2x14x14xf32, #tpu.memory_space<vmem>>, vector<2x1x1x14xf32>
    %297 = vector.shape_cast %296 : vector<2x1x1x14xf32> to vector<2x14xf32>
    %298 = vector.broadcast %168 : f32 to vector<2x14xf32>
    %299 = arith.mulf %298, %297 : vector<2x14xf32>
    %300 = arith.addf %295, %299 : vector<2x14xf32>
    %c0_133 = arith.constant 0 : index
    %c1_134 = arith.constant 1 : index
    %c0_135 = arith.constant 0 : index
    %c0_136 = arith.constant 0 : index
    %301 = vector.load %arg6[%c0_133, %c1_134, %c0_135, %c0_136] : memref<2x2x14x14xf32, #tpu.memory_space<vmem>>, vector<2x1x1x14xf32>
    %302 = vector.shape_cast %301 : vector<2x1x1x14xf32> to vector<2x14xf32>
    %303 = vector.shape_cast %300 : vector<2x14xf32> to vector<2x1x1x14xf32>
    tpu.vector_store %arg6[%c0_133, %c1_134, %c0_135, %c0_136], %303 {strides = array<i32>} : memref<2x2x14x14xf32, #tpu.memory_space<vmem>>, vector<2x1x1x14xf32>,
    %304 = vector.extract_strided_slice %167 {offsets = [0, 16], sizes = [2, 14], strides = [1, 1]} : vector<2x256xf32> to vector<2x14xf32>
    %c0_137 = arith.constant 0 : index
    %c1_138 = arith.constant 1 : index
    %c1_139 = arith.constant 1 : index
    %c0_140 = arith.constant 0 : index
    %305 = vector.load %arg5[%c0_137, %c1_138, %c1_139, %c0_140] : memref<2x2x14x14xf32, #tpu.memory_space<vmem>>, vector<2x1x1x14xf32>
    %306 = vector.shape_cast %305 : vector<2x1x1x14xf32> to vector<2x14xf32>
    %307 = vector.broadcast %168 : f32 to vector<2x14xf32>
    %308 = arith.mulf %307, %306 : vector<2x14xf32>
    %309 = arith.addf %304, %308 : vector<2x14xf32>
    %c0_141 = arith.constant 0 : index
    %c1_142 = arith.constant 1 : index
    %c1_143 = arith.constant 1 : index
    %c0_144 = arith.constant 0 : index
    %310 = vector.load %arg6[%c0_141, %c1_142, %c1_143, %c0_144] : memref<2x2x14x14xf32, #tpu.memory_space<vmem>>, vector<2x1x1x14xf32>
    %311 = vector.shape_cast %310 : vector<2x1x1x14xf32> to vector<2x14xf32>
    %312 = vector.shape_cast %309 : vector<2x14xf32> to vector<2x1x1x14xf32>
    tpu.vector_store %arg6[%c0_141, %c1_142, %c1_143, %c0_144], %312 {strides = array<i32>} : memref<2x2x14x14xf32, #tpu.memory_space<vmem>>, vector<2x1x1x14xf32>,
    %313 = vector.extract_strided_slice %167 {offsets = [0, 32], sizes = [2, 14], strides = [1, 1]} : vector<2x256xf32> to vector<2x14xf32>
    %c0_145 = arith.constant 0 : index
    %c1_146 = arith.constant 1 : index
    %c2_147 = arith.constant 2 : index
    %c0_148 = arith.constant 0 : index
    %314 = vector.load %arg5[%c0_145, %c1_146, %c2_147, %c0_148] : memref<2x2x14x14xf32, #tpu.memory_space<vmem>>, vector<2x1x1x14xf32>
    %315 = vector.shape_cast %314 : vector<2x1x1x14xf32> to vector<2x14xf32>
    %316 = vector.broadcast %168 : f32 to vector<2x14xf32>
    %317 = arith.mulf %316, %315 : vector<2x14xf32>
    %318 = arith.addf %313, %317 : vector<2x14xf32>
    %c0_149 = arith.constant 0 : index
    %c1_150 = arith.constant 1 : index
    %c2_151 = arith.constant 2 : index
    %c0_152 = arith.constant 0 : index
    %319 = vector.load %arg6[%c0_149, %c1_150, %c2_151, %c0_152] : memref<2x2x14x14xf32, #tpu.memory_space<vmem>>, vector<2x1x1x14xf32>
    %320 = vector.shape_cast %319 : vector<2x1x1x14xf32> to vector<2x14xf32>
    %321 = vector.shape_cast %318 : vector<2x14xf32> to vector<2x1x1x14xf32>
    tpu.vector_store %arg6[%c0_149, %c1_150, %c2_151, %c0_152], %321 {strides = array<i32>} : memref<2x2x14x14xf32, #tpu.memory_space<vmem>>, vector<2x1x1x14xf32>,
    %322 = vector.extract_strided_slice %167 {offsets = [0, 48], sizes = [2, 14], strides = [1, 1]} : vector<2x256xf32> to vector<2x14xf32>
    %c0_153 = arith.constant 0 : index
    %c1_154 = arith.constant 1 : index
    %c3_155 = arith.constant 3 : index
    %c0_156 = arith.constant 0 : index
    %323 = vector.load %arg5[%c0_153, %c1_154, %c3_155, %c0_156] : memref<2x2x14x14xf32, #tpu.memory_space<vmem>>, vector<2x1x1x14xf32>
    %324 = vector.shape_cast %323 : vector<2x1x1x14xf32> to vector<2x14xf32>
    %325 = vector.broadcast %168 : f32 to vector<2x14xf32>
    %326 = arith.mulf %325, %324 : vector<2x14xf32>
    %327 = arith.addf %322, %326 : vector<2x14xf32>
    %c0_157 = arith.constant 0 : index
    %c1_158 = arith.constant 1 : index
    %c3_159 = arith.constant 3 : index
    %c0_160 = arith.constant 0 : index
    %328 = vector.load %arg6[%c0_157, %c1_158, %c3_159, %c0_160] : memref<2x2x14x14xf32, #tpu.memory_space<vmem>>, vector<2x1x1x14xf32>
    %329 = vector.shape_cast %328 : vector<2x1x1x14xf32> to vector<2x14xf32>
    %330 = vector.shape_cast %327 : vector<2x14xf32> to vector<2x1x1x14xf32>
    tpu.vector_store %arg6[%c0_157, %c1_158, %c3_159, %c0_160], %330 {strides = array<i32>} : memref<2x2x14x14xf32, #tpu.memory_space<vmem>>, vector<2x1x1x14xf32>,
    %331 = vector.extract_strided_slice %167 {offsets = [0, 64], sizes = [2, 14], strides = [1, 1]} : vector<2x256xf32> to vector<2x14xf32>
    %c0_161 = arith.constant 0 : index
    %c1_162 = arith.constant 1 : index
    %c4_163 = arith.constant 4 : index
    %c0_164 = arith.constant 0 : index
    %332 = vector.load %arg5[%c0_161, %c1_162, %c4_163, %c0_164] : memref<2x2x14x14xf32, #tpu.memory_space<vmem>>, vector<2x1x1x14xf32>
    %333 = vector.shape_cast %332 : vector<2x1x1x14xf32> to vector<2x14xf32>
    %334 = vector.broadcast %168 : f32 to vector<2x14xf32>
    %335 = arith.mulf %334, %333 : vector<2x14xf32>
    %336 = arith.addf %331, %335 : vector<2x14xf32>
    %c0_165 = arith.constant 0 : index
    %c1_166 = arith.constant 1 : index
    %c4_167 = arith.constant 4 : index
    %c0_168 = arith.constant 0 : index
    %337 = vector.load %arg6[%c0_165, %c1_166, %c4_167, %c0_168] : memref<2x2x14x14xf32, #tpu.memory_space<vmem>>, vector<2x1x1x14xf32>
    %338 = vector.shape_cast %337 : vector<2x1x1x14xf32> to vector<2x14xf32>
    %339 = vector.shape_cast %336 : vector<2x14xf32> to vector<2x1x1x14xf32>
    tpu.vector_store %arg6[%c0_165, %c1_166, %c4_167, %c0_168], %339 {strides = array<i32>} : memref<2x2x14x14xf32, #tpu.memory_space<vmem>>, vector<2x1x1x14xf32>,
    %340 = vector.extract_strided_slice %167 {offsets = [0, 80], sizes = [2, 14], strides = [1, 1]} : vector<2x256xf32> to vector<2x14xf32>
    %c0_169 = arith.constant 0 : index
    %c1_170 = arith.constant 1 : index
    %c5_171 = arith.constant 5 : index
    %c0_172 = arith.constant 0 : index
    %341 = vector.load %arg5[%c0_169, %c1_170, %c5_171, %c0_172] : memref<2x2x14x14xf32, #tpu.memory_space<vmem>>, vector<2x1x1x14xf32>
    %342 = vector.shape_cast %341 : vector<2x1x1x14xf32> to vector<2x14xf32>
    %343 = vector.broadcast %168 : f32 to vector<2x14xf32>
    %344 = arith.mulf %343, %342 : vector<2x14xf32>
    %345 = arith.addf %340, %344 : vector<2x14xf32>
    %c0_173 = arith.constant 0 : index
    %c1_174 = arith.constant 1 : index
    %c5_175 = arith.constant 5 : index
    %c0_176 = arith.constant 0 : index
    %346 = vector.load %arg6[%c0_173, %c1_174, %c5_175, %c0_176] : memref<2x2x14x14xf32, #tpu.memory_space<vmem>>, vector<2x1x1x14xf32>
    %347 = vector.shape_cast %346 : vector<2x1x1x14xf32> to vector<2x14xf32>
    %348 = vector.shape_cast %345 : vector<2x14xf32> to vector<2x1x1x14xf32>
    tpu.vector_store %arg6[%c0_173, %c1_174, %c5_175, %c0_176], %348 {strides = array<i32>} : memref<2x2x14x14xf32, #tpu.memory_space<vmem>>, vector<2x1x1x14xf32>,
    %349 = vector.extract_strided_slice %167 {offsets = [0, 96], sizes = [2, 14], strides = [1, 1]} : vector<2x256xf32> to vector<2x14xf32>
    %c0_177 = arith.constant 0 : index
    %c1_178 = arith.constant 1 : index
    %c6_179 = arith.constant 6 : index
    %c0_180 = arith.constant 0 : index
    %350 = vector.load %arg5[%c0_177, %c1_178, %c6_179, %c0_180] : memref<2x2x14x14xf32, #tpu.memory_space<vmem>>, vector<2x1x1x14xf32>
    %351 = vector.shape_cast %350 : vector<2x1x1x14xf32> to vector<2x14xf32>
    %352 = vector.broadcast %168 : f32 to vector<2x14xf32>
    %353 = arith.mulf %352, %351 : vector<2x14xf32>
    %354 = arith.addf %349, %353 : vector<2x14xf32>
    %c0_181 = arith.constant 0 : index
    %c1_182 = arith.constant 1 : index
    %c6_183 = arith.constant 6 : index
    %c0_184 = arith.constant 0 : index
    %355 = vector.load %arg6[%c0_181, %c1_182, %c6_183, %c0_184] : memref<2x2x14x14xf32, #tpu.memory_space<vmem>>, vector<2x1x1x14xf32>
    %356 = vector.shape_cast %355 : vector<2x1x1x14xf32> to vector<2x14xf32>
    %357 = vector.shape_cast %354 : vector<2x14xf32> to vector<2x1x1x14xf32>
    tpu.vector_store %arg6[%c0_181, %c1_182, %c6_183, %c0_184], %357 {strides = array<i32>} : memref<2x2x14x14xf32, #tpu.memory_space<vmem>>, vector<2x1x1x14xf32>,
    %358 = vector.extract_strided_slice %167 {offsets = [0, 112], sizes = [2, 14], strides = [1, 1]} : vector<2x256xf32> to vector<2x14xf32>
    %c0_185 = arith.constant 0 : index
    %c1_186 = arith.constant 1 : index
    %c7_187 = arith.constant 7 : index
    %c0_188 = arith.constant 0 : index
    %359 = vector.load %arg5[%c0_185, %c1_186, %c7_187, %c0_188] : memref<2x2x14x14xf32, #tpu.memory_space<vmem>>, vector<2x1x1x14xf32>
    %360 = vector.shape_cast %359 : vector<2x1x1x14xf32> to vector<2x14xf32>
    %361 = vector.broadcast %168 : f32 to vector<2x14xf32>
    %362 = arith.mulf %361, %360 : vector<2x14xf32>
    %363 = arith.addf %358, %362 : vector<2x14xf32>
    %c0_189 = arith.constant 0 : index
    %c1_190 = arith.constant 1 : index
    %c7_191 = arith.constant 7 : index
    %c0_192 = arith.constant 0 : index
    %364 = vector.load %arg6[%c0_189, %c1_190, %c7_191, %c0_192] : memref<2x2x14x14xf32, #tpu.memory_space<vmem>>, vector<2x1x1x14xf32>
    %365 = vector.shape_cast %364 : vector<2x1x1x14xf32> to vector<2x14xf32>
    %366 = vector.shape_cast %363 : vector<2x14xf32> to vector<2x1x1x14xf32>
    tpu.vector_store %arg6[%c0_189, %c1_190, %c7_191, %c0_192], %366 {strides = array<i32>} : memref<2x2x14x14xf32, #tpu.memory_space<vmem>>, vector<2x1x1x14xf32>,
    %367 = vector.extract_strided_slice %167 {offsets = [0, 128], sizes = [2, 14], strides = [1, 1]} : vector<2x256xf32> to vector<2x14xf32>
    %c0_193 = arith.constant 0 : index
    %c1_194 = arith.constant 1 : index
    %c8_195 = arith.constant 8 : index
    %c0_196 = arith.constant 0 : index
    %368 = vector.load %arg5[%c0_193, %c1_194, %c8_195, %c0_196] : memref<2x2x14x14xf32, #tpu.memory_space<vmem>>, vector<2x1x1x14xf32>
    %369 = vector.shape_cast %368 : vector<2x1x1x14xf32> to vector<2x14xf32>
    %370 = vector.broadcast %168 : f32 to vector<2x14xf32>
    %371 = arith.mulf %370, %369 : vector<2x14xf32>
    %372 = arith.addf %367, %371 : vector<2x14xf32>
    %c0_197 = arith.constant 0 : index
    %c1_198 = arith.constant 1 : index
    %c8_199 = arith.constant 8 : index
    %c0_200 = arith.constant 0 : index
    %373 = vector.load %arg6[%c0_197, %c1_198, %c8_199, %c0_200] : memref<2x2x14x14xf32, #tpu.memory_space<vmem>>, vector<2x1x1x14xf32>
    %374 = vector.shape_cast %373 : vector<2x1x1x14xf32> to vector<2x14xf32>
    %375 = vector.shape_cast %372 : vector<2x14xf32> to vector<2x1x1x14xf32>
    tpu.vector_store %arg6[%c0_197, %c1_198, %c8_199, %c0_200], %375 {strides = array<i32>} : memref<2x2x14x14xf32, #tpu.memory_space<vmem>>, vector<2x1x1x14xf32>,
    %376 = vector.extract_strided_slice %167 {offsets = [0, 144], sizes = [2, 14], strides = [1, 1]} : vector<2x256xf32> to vector<2x14xf32>
    %c0_201 = arith.constant 0 : index
    %c1_202 = arith.constant 1 : index
    %c9_203 = arith.constant 9 : index
    %c0_204 = arith.constant 0 : index
    %377 = vector.load %arg5[%c0_201, %c1_202, %c9_203, %c0_204] : memref<2x2x14x14xf32, #tpu.memory_space<vmem>>, vector<2x1x1x14xf32>
    %378 = vector.shape_cast %377 : vector<2x1x1x14xf32> to vector<2x14xf32>
    %379 = vector.broadcast %168 : f32 to vector<2x14xf32>
    %380 = arith.mulf %379, %378 : vector<2x14xf32>
    %381 = arith.addf %376, %380 : vector<2x14xf32>
    %c0_205 = arith.constant 0 : index
    %c1_206 = arith.constant 1 : index
    %c9_207 = arith.constant 9 : index
    %c0_208 = arith.constant 0 : index
    %382 = vector.load %arg6[%c0_205, %c1_206, %c9_207, %c0_208] : memref<2x2x14x14xf32, #tpu.memory_space<vmem>>, vector<2x1x1x14xf32>
    %383 = vector.shape_cast %382 : vector<2x1x1x14xf32> to vector<2x14xf32>
    %384 = vector.shape_cast %381 : vector<2x14xf32> to vector<2x1x1x14xf32>
    tpu.vector_store %arg6[%c0_205, %c1_206, %c9_207, %c0_208], %384 {strides = array<i32>} : memref<2x2x14x14xf32, #tpu.memory_space<vmem>>, vector<2x1x1x14xf32>,
    %385 = vector.extract_strided_slice %167 {offsets = [0, 160], sizes = [2, 14], strides = [1, 1]} : vector<2x256xf32> to vector<2x14xf32>
    %c0_209 = arith.constant 0 : index
    %c1_210 = arith.constant 1 : index
    %c10_211 = arith.constant 10 : index
    %c0_212 = arith.constant 0 : index
    %386 = vector.load %arg5[%c0_209, %c1_210, %c10_211, %c0_212] : memref<2x2x14x14xf32, #tpu.memory_space<vmem>>, vector<2x1x1x14xf32>
    %387 = vector.shape_cast %386 : vector<2x1x1x14xf32> to vector<2x14xf32>
    %388 = vector.broadcast %168 : f32 to vector<2x14xf32>
    %389 = arith.mulf %388, %387 : vector<2x14xf32>
    %390 = arith.addf %385, %389 : vector<2x14xf32>
    %c0_213 = arith.constant 0 : index
    %c1_214 = arith.constant 1 : index
    %c10_215 = arith.constant 10 : index
    %c0_216 = arith.constant 0 : index
    %391 = vector.load %arg6[%c0_213, %c1_214, %c10_215, %c0_216] : memref<2x2x14x14xf32, #tpu.memory_space<vmem>>, vector<2x1x1x14xf32>
    %392 = vector.shape_cast %391 : vector<2x1x1x14xf32> to vector<2x14xf32>
    %393 = vector.shape_cast %390 : vector<2x14xf32> to vector<2x1x1x14xf32>
    tpu.vector_store %arg6[%c0_213, %c1_214, %c10_215, %c0_216], %393 {strides = array<i32>} : memref<2x2x14x14xf32, #tpu.memory_space<vmem>>, vector<2x1x1x14xf32>,
    %394 = vector.extract_strided_slice %167 {offsets = [0, 176], sizes = [2, 14], strides = [1, 1]} : vector<2x256xf32> to vector<2x14xf32>
    %c0_217 = arith.constant 0 : index
    %c1_218 = arith.constant 1 : index
    %c11_219 = arith.constant 11 : index
    %c0_220 = arith.constant 0 : index
    %395 = vector.load %arg5[%c0_217, %c1_218, %c11_219, %c0_220] : memref<2x2x14x14xf32, #tpu.memory_space<vmem>>, vector<2x1x1x14xf32>
    %396 = vector.shape_cast %395 : vector<2x1x1x14xf32> to vector<2x14xf32>
    %397 = vector.broadcast %168 : f32 to vector<2x14xf32>
    %398 = arith.mulf %397, %396 : vector<2x14xf32>
    %399 = arith.addf %394, %398 : vector<2x14xf32>
    %c0_221 = arith.constant 0 : index
    %c1_222 = arith.constant 1 : index
    %c11_223 = arith.constant 11 : index
    %c0_224 = arith.constant 0 : index
    %400 = vector.load %arg6[%c0_221, %c1_222, %c11_223, %c0_224] : memref<2x2x14x14xf32, #tpu.memory_space<vmem>>, vector<2x1x1x14xf32>
    %401 = vector.shape_cast %400 : vector<2x1x1x14xf32> to vector<2x14xf32>
    %402 = vector.shape_cast %399 : vector<2x14xf32> to vector<2x1x1x14xf32>
    tpu.vector_store %arg6[%c0_221, %c1_222, %c11_223, %c0_224], %402 {strides = array<i32>} : memref<2x2x14x14xf32, #tpu.memory_space<vmem>>, vector<2x1x1x14xf32>,
    %403 = vector.extract_strided_slice %167 {offsets = [0, 192], sizes = [2, 14], strides = [1, 1]} : vector<2x256xf32> to vector<2x14xf32>
    %c0_225 = arith.constant 0 : index
    %c1_226 = arith.constant 1 : index
    %c12_227 = arith.constant 12 : index
    %c0_228 = arith.constant 0 : index
    %404 = vector.load %arg5[%c0_225, %c1_226, %c12_227, %c0_228] : memref<2x2x14x14xf32, #tpu.memory_space<vmem>>, vector<2x1x1x14xf32>
    %405 = vector.shape_cast %404 : vector<2x1x1x14xf32> to vector<2x14xf32>
    %406 = vector.broadcast %168 : f32 to vector<2x14xf32>
    %407 = arith.mulf %406, %405 : vector<2x14xf32>
    %408 = arith.addf %403, %407 : vector<2x14xf32>
    %c0_229 = arith.constant 0 : index
    %c1_230 = arith.constant 1 : index
    %c12_231 = arith.constant 12 : index
    %c0_232 = arith.constant 0 : index
    %409 = vector.load %arg6[%c0_229, %c1_230, %c12_231, %c0_232] : memref<2x2x14x14xf32, #tpu.memory_space<vmem>>, vector<2x1x1x14xf32>
    %410 = vector.shape_cast %409 : vector<2x1x1x14xf32> to vector<2x14xf32>
    %411 = vector.shape_cast %408 : vector<2x14xf32> to vector<2x1x1x14xf32>
    tpu.vector_store %arg6[%c0_229, %c1_230, %c12_231, %c0_232], %411 {strides = array<i32>} : memref<2x2x14x14xf32, #tpu.memory_space<vmem>>, vector<2x1x1x14xf32>,
    %412 = vector.extract_strided_slice %167 {offsets = [0, 208], sizes = [2, 14], strides = [1, 1]} : vector<2x256xf32> to vector<2x14xf32>
    %c0_233 = arith.constant 0 : index
    %c1_234 = arith.constant 1 : index
    %c13_235 = arith.constant 13 : index
    %c0_236 = arith.constant 0 : index
    %413 = vector.load %arg5[%c0_233, %c1_234, %c13_235, %c0_236] : memref<2x2x14x14xf32, #tpu.memory_space<vmem>>, vector<2x1x1x14xf32>
    %414 = vector.shape_cast %413 : vector<2x1x1x14xf32> to vector<2x14xf32>
    %415 = vector.broadcast %168 : f32 to vector<2x14xf32>
    %416 = arith.mulf %415, %414 : vector<2x14xf32>
    %417 = arith.addf %412, %416 : vector<2x14xf32>
    %c0_237 = arith.constant 0 : index
    %c1_238 = arith.constant 1 : index
    %c13_239 = arith.constant 13 : index
    %c0_240 = arith.constant 0 : index
    %418 = vector.load %arg6[%c0_237, %c1_238, %c13_239, %c0_240] : memref<2x2x14x14xf32, #tpu.memory_space<vmem>>, vector<2x1x1x14xf32>
    %419 = vector.shape_cast %418 : vector<2x1x1x14xf32> to vector<2x14xf32>
    %420 = vector.shape_cast %417 : vector<2x14xf32> to vector<2x1x1x14xf32>
    tpu.vector_store %arg6[%c0_237, %c1_238, %c13_239, %c0_240], %420 {strides = array<i32>} : memref<2x2x14x14xf32, #tpu.memory_space<vmem>>, vector<2x1x1x14xf32>,
    return
  }
  func.func @transform_0(%arg0: i32) -> i32 {
    %c0_i32 = arith.constant 0 : i32
    %c0_i32_0 = arith.constant 0 : i32
    return %c0_i32 : i32
  }
  func.func @transform_1(%arg0: i32) -> i32 {
    %c0_i32 = arith.constant 0 : i32
    %c0_i32_0 = arith.constant 0 : i32
    return %c0_i32 : i32
  }
  func.func @transform_2(%arg0: i32) -> i32 {
    %c0_i32 = arith.constant 0 : i32
    %c0_i32_0 = arith.constant 0 : i32
    return %c0_i32 : i32
  }
  func.func @transform_3(%arg0: i32) -> (i32, i32, i32) {
    %c0_i32 = arith.constant 0 : i32
    %c0_i32_0 = arith.constant 0 : i32
    %c0_i32_1 = arith.constant 0 : i32
    return %arg0, %c0_i32, %c0_i32_0 : i32, i32, i32
  }
  func.func @transform_4(%arg0: i32) -> (i32, i32, i32, i32) {
    %c0_i32 = arith.constant 0 : i32
    %c0_i32_0 = arith.constant 0 : i32
    %c0_i32_1 = arith.constant 0 : i32
    %c0_i32_2 = arith.constant 0 : i32
    return %arg0, %c0_i32, %c0_i32_0, %c0_i32_1 : i32, i32, i32, i32
  }
  func.func @transform_5(%arg0: i32) -> (i32, i32, i32, i32) {
    %c0_i32 = arith.constant 0 : i32
    %c0_i32_0 = arith.constant 0 : i32
    %c0_i32_1 = arith.constant 0 : i32
    %c0_i32_2 = arith.constant 0 : i32
    return %arg0, %c0_i32, %c0_i32_0, %c0_i32_1 : i32, i32, i32, i32
  }
}

</mosaic_0001>

<bundles_post_ra>
// kernel: tpu_custom_call.1
= control target key start
LH: loop header
LB: loop body
LE: loop exit
PB: predicated region body
PF: predicated region fallthrough
CT: control target
= control target key end

     0   :  { %s3910_s0 = inlined_call_operand.vmem [shape: f32[36], index: 0, kind: input, shape index: {}]   ;;  %s3911_s1 = inlined_call_operand.vmem [shape: f32[2], index: 1, kind: input, shape index: {}]   ;;  %s3912_s2 = inlined_call_operand.<no memory space> [shape: f32[1], index: 2, kind: input, shape index: {}]   ;;  %s3913_s3 = inlined_call_operand.vmem [shape: f32[2,2,256], index: 3, kind: input, shape index: {}]   ;;  %s3914_s4 = inlined_call_operand.vmem [shape: f32[2,2,14,14], index: 4, kind: input, shape index: {}]   ;;  %s3915_s5 = inlined_call_operand.vmem [shape: f32[2,2,14,14], index: 5, kind: output, shape index: {}]  }
   0x1   :  { %3936 = sst [smem:[#allocation10_spill]] %s3914_s4 }
   0x2   :  { %3937 = sst [smem:[#allocation11_spill]] %s3915_s5 }
   0x3   :  { %11 = vsyncpa [#allocation4], 0  ;;  %s19_s20 = sshll.u32 %s3910_s0, 4  ;;  %s20_s20 = int_to_ptr.vmem [resolvable:$true] %s19_s20 }
   0x4   :  { %12 = vsyncpa [#allocation6], 0  ;;  %s29_s23 = sshll.u32 %s3911_s1, 4  ;;  %s2463_s24 = scalar_lea.vmem %s20_s20, 16  ;;  %s30_s23 = int_to_ptr.vmem [resolvable:$true] %s29_s23 }
   0x5   :  { %p2464_p0 = scmp.ne.s32.totalorder %s20_s20, %s2463_s24  ;;  %p2468_p1 = scmp.lt.s32.totalorder %s20_s20, %s20_s20 }
   0x6   :  { %p2469_p2 = scmp.lt.s32.totalorder %s2463_s24, %s2463_s24 }
   0x8   :  { %p2470_p3 = por %p2469_p2, %p2468_p1 }
   0xa   :  { %p2471_p4 = pnand %p2470_p3, %p2464_p0 }
   0xc   :  { %2474 = shalt.err (!%p2471_p4)
}
   0xd   :  { %s2491_s25 = smov [#allocation3]   ;;  %s2475_s26 = scalar_lea.vmem %s30_s23, 16 }
   0xe   :  { %22 = dma.vmem_to_smem %s20_s20, 16, %s2491_s25, [#allocation4]  }
   0xf   :  { %p2476_p5 = scmp.ne.s32.totalorder %s30_s23, %s2475_s26  ;;  %p2480_p6 = scmp.lt.s32.totalorder %s30_s23, %s30_s23 }
  0x10   :  { %p2481_p7 = scmp.lt.s32.totalorder %s2475_s26, %s2475_s26 }
  0x12   :  { %p2482_p8 = por %p2481_p7, %p2480_p6 }
  0x14   :  { %p2483_p9 = pnand %p2482_p8, %p2476_p5 }
  0x16   :  { %2486 = shalt.err (!%p2483_p9)
}
  0x17   :  { %s2492_s0 = smov [#allocation5]  }
  0x18   :  { %32 = dma.vmem_to_smem %s30_s23, 16, %s2492_s0, [#allocation6]  }
  0x19   :  { %2487 = dma.done.wait [#allocation4], 16  }
  0x1a   :  { %2488 = vsyncadd [#allocation4], 4294967280 }
  0x1b   :  { %2489 = dma.done.wait [#allocation6], 16  }
  0x1c   :  { %2490 = vsyncadd [#allocation6], 4294967280 }
  0x1d   :  { %45 = sfence }
  0x1e   :  { %v2546_v0 = vld [vmem:[%s3913_s3] ss:$2 sm:$0x3]  ;;  %v105_v1 = vlaneseq  ;;  %v2551_v2 = vld [vmem:[%s3913_s3 + $0x4] ss:$2 sm:$0x3]  ;;  %v2602_v20 = vstv %s3912_s2 }
  0x1f   :  { %v2493_v3 = vmov 1966171168   ;;  %v101_v6 = vcombine.low %v2546_v0, %v2551_v2  ;;  %s2494_s30 = smov 126   ;;  %s2495_s6 = smov 127   ;;  %v1309_v21 = vld [vmem:[%s3914_s4 + $0x21] sm:$0x1] }
  0x20   :  { %v103_v4 = vunpack.c.l.s4 %v2493_v3  ;;  %v2554_v5 = vshrl.u32 %v105_v1, 7  ;;  %s3928_s7 = smov 112   ;;  %s2497_s8 = smov 111   ;;  %v2575_v13 = vld [vmem:[%s3913_s3 + $0x1] ss:$2 sm:$0x3]  ;;  %v1311_v23 = vmul.f32 %v1309_v21, %v2602_v20 }
  0x21   :  { %v2580_v14 = vld [vmem:[%s3913_s3 + $0x5] ss:$2 sm:$0x3]  ;;  %s2498_s13 = smov 110   ;;  %s3926_s14 = smov 96   ;;  %vm1305_vm8 = vcmask 106496  }
  0x22   :  { %v104_v7 = vunpack.c.0.s8 %v103_v4  ;;  %v712_v15 = vcombine.low %v2575_v13, %v2580_v14  ;;  %s2500_s15 = smov 95   ;;  %s2501_s16 = smov 94   ;;  %v1308_v22 = vld [vmem:[%s3914_s4 + $0x1] sm:$0x1]  ;;  %v1369_v25 = vld [vmem:[%s3914_s4 + $0x22] sm:$0x1] }
  0x23   :  { %v1310_v24 = vmul.f32 %v1308_v22, %v2602_v20  ;;  %v1368_v26 = vld [vmem:[%s3914_s4 + $0x2] sm:$0x1]  ;;  %v1371_v27 = vmul.f32 %v1369_v25, %v2602_v20  ;;  %v1429_v31 = vld [vmem:[%s3914_s4 + $0x23] sm:$0x1]  ;;  %v1489_v39 = vld [vmem:[%s3914_s4 + $0x24] sm:$0x1] }
  0x24   :  { %v2559_v8 = vsub.s32 %v104_v7, %v2554_v5  ;;  %v1370_v30 = vmul.f32 %v1368_v26, %v2602_v20  ;;  %v1428_v32 = vld [vmem:[%s3914_s4 + $0x3] sm:$0x1]  ;;  %v1431_v34 = vmul.f32 %v1429_v31, %v2602_v20  ;;  %v1488_v40 = vld [vmem:[%s3914_s4 + $0x4] sm:$0x1]  ;;  %v1491_v43 = vmul.f32 %v1489_v39, %v2602_v20  ;;  %v1549_v47 = vld [vmem:[%s3914_s4 + $0x25] sm:$0x1] }
  0x25   :  { %v1430_v35 = vmul.f32 %v1428_v32, %v2602_v20  ;;  %v1490_v46 = vmul.f32 %v1488_v40, %v2602_v20  ;;  %v1548_v48 = vld [vmem:[%s3914_s4 + $0x5] sm:$0x1]  ;;  %s3918_s12 = smov 32   ;;  %v1551_v53 = vmul.f32 %v1549_v47, %v2602_v20  ;;  %v1609_v55 = vld [vmem:[%s3914_s4 + $0x26] sm:$0x1]  ;;  %s3920_s17 = smov 48  }
  0x26   :  { %v108_v9 = vrot.slane %v101_v6, %v2559_v8  ;;  %v719_v16 = vrot.slane %v712_v15, %v2559_v8  ;;  %v1334_v28 = vrot.slane %v1311_v23, %v2559_v8  ;;  %v1320_v29 = vrot.slane %v1310_v24, %v2559_v8  ;;  %v1608_v56 = vld [vmem:[%s3914_s4 + $0x6] sm:$0x1]  ;;  %v1669_v63 = vld [vmem:[%s3914_s4 + $0x27] sm:$0x1]  ;;  %s3922_s22 = smov 64   ;;  %s3924_s26 = smov 80  }
  0x27   :  { %v1394_v33 = vrot.slane %v1371_v27, %v2559_v8  ;;  %v1380_v38 = vrot.slane %v1370_v30, %v2559_v8  ;;  %v1454_v41 = vrot.slane %v1431_v34, %v2559_v8  ;;  %v1440_v42 = vrot.slane %v1430_v35, %v2559_v8  ;;  %v1668_v3 = vld [vmem:[%s3914_s4 + $0x7] sm:$0x1]  ;;  %v2395_v15 = vld [vmem:[%s3914_s4 + $0x11] sm:$0x1]  ;;  %v2400_v23 = vld [vmem:[%s3914_s4 + $0x32] sm:$0x1] }
  0x28   :  { %v116_v10 = vrot.slane %v108_v9, %v2559_v8  ;;  %v109_v11 = vcombine.high %v108_v9, %v108_v9  ;;  %v720_v17 = vcombine.high %v719_v16, %v719_v16  ;;  %v727_v19 = vrot.slane %v719_v16, %v2559_v8  ;;  %v2399_v24 = vld [vmem:[%s3914_s4 + $0x12] sm:$0x1]  ;;  %v2404_v31 = vld [vmem:[%s3914_s4 + $0x33] sm:$0x1]  ;;  %v2408_v39 = vld [vmem:[%s3914_s4 + $0x34] sm:$0x1] }
  0x29   :  { %v1341_v36 = vrot.slane %v1334_v28, %v2559_v8  ;;  %v1327_v37 = vrot.slane %v1320_v29, %v2559_v8  ;;  %v1401_v44 = vrot.slane %v1394_v33, %v2559_v8  ;;  %v1387_v45 = vrot.slane %v1380_v38, %v2559_v8  ;;  %v2403_v32 = vld [vmem:[%s3914_s4 + $0x13] sm:$0x1]  ;;  %v2407_v40 = vld [vmem:[%s3914_s4 + $0x14] sm:$0x1]  ;;  %v2412_v47 = vld [vmem:[%s3914_s4 + $0x35] sm:$0x1] }
  0x2a   :  { %199 = vrot.lane.b32.xlu1 %v116_v10, %s2494_s30  ;;  %126 = vrot.lane.b32.xlu0 %v116_v10, %s2495_s6  ;;  %v123_v12 = vrot.slane %v109_v11, %v2559_v8  ;;  %v734_v18 = vrot.slane %v720_v17, %v2559_v8  ;;  %v1461_v49 = vrot.slane %v1454_v41, %v2559_v8  ;;  %s2770_s24 = sld [smem:[#allocation3 + $0x2]]  ;;  %s2772_s25 = sld [smem:[#allocation3 + $0x14]] }
  0x2b   :  { %v1447_v50 = vrot.slane %v1440_v42, %v2559_v8  ;;  %v1514_v51 = vrot.slane %v1491_v43, %v2559_v8  ;;  %v1500_v52 = vrot.slane %v1490_v46, %v2559_v8  ;;  %v1550_v54 = vmul.f32 %v1548_v48, %v2602_v20  ;;  %v2411_v48 = vld [vmem:[%s3914_s4 + $0x15] sm:$0x1]  ;;  %s2780_s27 = sld [smem:[#allocation3 + $0x3]]  ;;  %s2782_s28 = sld [smem:[#allocation3]] }
  0x2c   :  { %v1611_v58 = vmul.f32 %v1609_v55, %v2602_v20  ;;  %v1610_v59 = vmul.f32 %v1608_v56, %v2602_v20  ;;  %v1574_v61 = vrot.slane %v1551_v53, %v2559_v8  ;;  %v1671_v6 = vmul.f32 %v1669_v63, %v2602_v20  ;;  %v2416_v55 = vld [vmem:[%s3914_s4 + $0x36] sm:$0x1]  ;;  %s2794_s9 = sld [smem:[#allocation3 + $0x4]]  ;;  %s2796_s10 = sld [smem:[#allocation3 + $0x16]] }
  0x2d   :  { %v1521_v57 = vrot.slane %v1514_v51, %v2559_v8  ;;  %v1507_v60 = vrot.slane %v1500_v52, %v2559_v8  ;;  %v1560_v62 = vrot.slane %v1550_v54, %v2559_v8  ;;  %v1670_v7 = vmul.f32 %v1668_v3, %v2602_v20  ;;  %v2415_v56 = vld [vmem:[%s3914_s4 + $0x16] sm:$0x1]  ;;  %v2419_v3 = vld [vmem:[%s3914_s4 + $0x17] sm:$0x1]  ;;  %s2798_s11 = sld [smem:[#allocation3 + $0x12]]  ;;  %s2809_s3 = sld [smem:[#allocation5 + $0x1]] }
  0x2e   :  { %270 = vrot.lane.b32.xlu0 %v116_v10, %s3928_s7  ;;  %201 = vrot.lane.b32.xlu1 %v123_v12, %s2494_s30  ;;  %v1634_v4 = vrot.slane %v1611_v58, %v2559_v8  ;;  %v1581_v9 = vrot.slane %v1574_v61, %v2559_v8  ;;  %v1620_v11 = vrot.slane %v1610_v59, %v2559_v8  ;;  %s2816_s18 = sld [smem:[#allocation3 + $0x5]]  ;;  %s2818_s19 = sld [smem:[#allocation3 + $0x17]] }
  0x2f   :  { %v1694_v17 = vrot.slane %v1671_v6, %v2559_v8  ;;  %v1834_v22 = vmul.f32 %v2395_v15, %v2602_v20  ;;  %v1895_v27 = vmul.f32 %v2400_v23, %v2602_v20  ;;  %v1894_v30 = vmul.f32 %v2399_v24, %v2602_v20  ;;  %s2823_s20 = sld [smem:[#allocation3 + $0x6]]  ;;  %s2825_s21 = sld [smem:[#allocation3 + $0x18]] }
  0x30   :  { %v1641_v16 = vrot.slane %v1634_v4, %v2559_v8  ;;  %v1955_v34 = vmul.f32 %v2404_v31, %v2602_v20  ;;  %v1954_v35 = vmul.f32 %v2403_v32, %v2602_v20  ;;  %v2015_v42 = vmul.f32 %v2408_v39, %v2602_v20  ;;  %s2827_s23 = sld [smem:[#allocation3 + $0x7]]  ;;  %s2829_s2 = sld [smem:[#allocation3 + $0x9]] }
  0x31   :  { %v1701_v25 = vrot.slane %v1694_v17, %v2559_v8  ;;  %v1844_v29 = vrot.slane %v1834_v22, %v2559_v8  ;;  %v1918_v33 = vrot.slane %v1895_v27, %v2559_v8  ;;  %v1904_v38 = vrot.slane %v1894_v30, %v2559_v8  ;;  %s2833_s0 = sld [smem:[#allocation3 + $0x19]]  ;;  %s2835_s1 = sld [smem:[#allocation3 + $0x1b]] }
  0x32   :  { %341 = vrot.lane.b32.xlu0 %v116_v10, %s2497_s8  ;;  %272 = vrot.lane.b32.xlu1 %v123_v12, %s3928_s7  ;;  %v1978_v41 = vrot.slane %v1955_v34, %v2559_v8  ;;  %v2014_v43 = vmul.f32 %v2407_v40, %v2602_v20  ;;  %v1964_v46 = vrot.slane %v1954_v35, %v2559_v8  ;;  %s2842_s29 = sld [smem:[#allocation3 + $0x8]]  ;;  %v238_v22 = vstv %s2772_s25  ;;  %s2902_s5 = sld [smem:[#allocation3 + $0x21]] }
  0x33   :  { %v2075_v53 = vmul.f32 %v2412_v47, %v2602_v20  ;;  %v2074_v54 = vmul.f32 %v2411_v48, %v2602_v20  ;;  %v2135_v59 = vmul.f32 %v2416_v55, %v2602_v20  ;;  %v2134_v63 = vmul.f32 %v2415_v56, %v2602_v20  ;;  %s3964_s25 = smov 32  }
  0x34   :  { %v2024_v51 = vrot.slane %v2014_v43, %v2559_v8  ;;  %v1971_v52 = vrot.slane %v1964_v46, %v2559_v8  ;;  %3938 = sst [smem:[#allocation9_spill]] %s2816_s18  ;;  %v277_v23 = vstv %s2780_s27  ;;  %v380_v31 = vstv %s2796_s10  ;;  %s3965_s27 = smov 16  }
  0x35   :  { %v2098_v61 = vrot.slane %v2075_v53, %v2559_v8  ;;  %v2158_v4 = vrot.slane %v2135_v59, %v2559_v8  ;;  %v85_v34 = vstv %s2809_s3  ;;  %v451_v40 = vstv %s2818_s19  ;;  %s2894_s3 = sld [smem:[#allocation3 + $0x20]]  ;;  %s3958_s19 = smov 112  }
  0x36   :  { %343 = vrot.lane.b32.xlu1 %v123_v12, %s2497_s8  ;;  %128 = vrot.lane.b32.xlu0 %v123_v12, %s2495_s6  ;;  %v2031_v58 = vrot.slane %v2024_v51, %v2559_v8  ;;  %v522_v43 = vstv %s2825_s21 }
  0x37   :  { %v593_v48 = vstv %s2833_s0 }
  0x3a   :  { %414 = vrot.lane.b32.xlu1 %v123_v12, %s2498_s13  ;;  %412 = vrot.lane.b32.xlu0 %v116_v10, %s2498_s13 }
  0x3e   :  { %485 = vrot.lane.b32.xlu1 %v123_v12, %s3926_s14  ;;  %483 = vrot.lane.b32.xlu0 %v116_v10, %s3926_s14 }
  0x42   :  { %556 = vrot.lane.b32.xlu1 %v123_v12, %s2500_s15  ;;  %554 = vrot.lane.b32.xlu0 %v116_v10, %s2500_s15 }
  0x46   :  { %627 = vrot.lane.b32.xlu1 %v123_v12, %s2501_s16  ;;  %625 = vrot.lane.b32.xlu0 %v116_v10, %s2501_s16  ;;  %v1567_v10 = vrot.slane %v1560_v62, %v2559_v8  ;;  %v2396_v12 = vld [vmem:[%s3914_s4 + $0x31] sm:$0x1]  ;;  %v2084_v62 = vrot.slane %v2074_v54, %v2559_v8 }
  0x47   :  { %v1835_v21 = vmul.f32 %v2396_v12, %v2602_v20  ;;  %v2821_v12 = vand.u32 127, %v105_v1  ;;  %v2165_v1 = vrot.slane %v2158_v4, %v2559_v8 }
  0x49   :  { %v1858_v28 = vrot.slane %v1835_v21, %v2559_v8  ;;  %vm203_vm0 = vcmp.lt.s32.totalorder %v2821_v12, 126  ;;  %v94_v21 = vstv %s2798_s11  ;;  %s2863_s11 = sld [smem:[#allocation3 + $0x1d]]  ;;  %vm274_vm1 = vcmp.lt.s32.totalorder %v2821_v12, 112 }
  0x4a   :  { %739 = vrot.lane.b32.xlu1 %v734_v18, %s2495_s6  ;;  %737 = vrot.lane.b32.xlu0 %v727_v19, %s2495_s6  ;;  %s3916_s6 = smov 16   ;;  %v95_v32 = vmul.f32 %v94_v21, %v2546_v0  ;;  %vm345_vm2 = vcmp.lt.s32.totalorder %v2821_v12, 111  ;;  %vm132_vm3 = vcmp.lt.s32.totalorder %v2821_v12, 127  ;;  %vm416_vm4 = vcmp.lt.s32.totalorder %v2821_v12, 110 }
  0x4b   :  { %vm487_vm5 = vcmp.lt.s32.totalorder %v2821_v12, 96  ;;  %vm558_vm6 = vcmp.lt.s32.totalorder %v2821_v12, 95  ;;  %vm629_vm7 = vcmp.lt.s32.totalorder %v2821_v12, 94 }
  0x4c   :  { %v2909_v46 = vadd.f32 %v95_v32, %v85_v34 }
  0x4e   :  { %809 = vrot.lane.b32.xlu1 %v734_v18, %s2494_s30  ;;  %807 = vrot.lane.b32.xlu0 %v727_v19, %s2494_s30  ;;  %s2849_s30 = sld [smem:[#allocation3 + $0xa]] }
  0x52   :  { %879 = vrot.lane.b32.xlu1 %v734_v18, %s3928_s7  ;;  %877 = vrot.lane.b32.xlu0 %v727_v19, %s3928_s7 }
  0x56   :  { %949 = vrot.lane.b32.xlu1 %v734_v18, %s2497_s8  ;;  %947 = vrot.lane.b32.xlu0 %v727_v19, %s2497_s8  ;;  %s2792_s8 = sld [smem:[#allocation3 + $0x15]] }
  0x5a   :  { %1019 = vrot.lane.b32.xlu1 %v734_v18, %s2498_s13  ;;  %1017 = vrot.lane.b32.xlu0 %v727_v19, %s2498_s13  ;;  %s2800_s13 = sld [smem:[#allocation3 + $0x1]] }
  0x5c   :  { %v309_v27 = vstv %s2792_s8 }
  0x5e   :  { %1089 = vrot.lane.b32.xlu1 %v734_v18, %s3926_s14  ;;  %1087 = vrot.lane.b32.xlu0 %v727_v19, %s3926_s14 }
  0x60   :  { %v135_v35 = vstv %s2800_s13 }
  0x62   :  { %1159 = vrot.lane.b32.xlu1 %v734_v18, %s2500_s15  ;;  %1157 = vrot.lane.b32.xlu0 %v727_v19, %s2500_s15  ;;  %s2802_s15 = sld [smem:[#allocation3 + $0x13]] }
  0x66   :  { %1229 = vrot.lane.b32.xlu1 %v734_v18, %s2501_s16  ;;  %1227 = vrot.lane.b32.xlu0 %v727_v19, %s2501_s16  ;;  %v1680_v18 = vrot.slane %v1670_v7, %v2559_v8  ;;  %v1627_v19 = vrot.slane %v1620_v11, %v2559_v8  ;;  %v2194_v7 = vmul.f32 %v2419_v3, %v2602_v20  ;;  %s2807_s16 = sld [smem:[#allocation5]] }
  0x67   :  { %v2144_v11 = vrot.slane %v2134_v63, %v2559_v8 }
  0x68   :  { %v1687_v26 = vrot.slane %v1680_v18, %v2559_v8  ;;  %v2204_v18 = vrot.slane %v2194_v7, %v2559_v8 }
  0x69   :  { %v2151_v17 = vrot.slane %v2144_v11, %v2559_v8 }
  0x6a   :  { %1344 = vrot.lane.b32.xlu1 %v1341_v36, %s3916_s6  ;;  %1342 = vrot.lane.b32.xlu0 %v1327_v37, %s3916_s6  ;;  %v1865_v36 = vrot.slane %v1858_v28, %v2559_v8  ;;  %v1851_v37 = vrot.slane %v1844_v29, %v2559_v8  ;;  %v348_v28 = vstv %s2794_s9  ;;  %v2211_v30 = vrot.slane %v2204_v18, %v2559_v8 }
  0x6c   :  { %v83_v29 = vstv %s2807_s16  ;;  %s2874_s16 = sld [smem:[#allocation3 + $0x1e]] }
  0x6e   :  { %1404 = vrot.lane.b32.xlu1 %v1401_v44, %s3918_s12  ;;  %1402 = vrot.lane.b32.xlu0 %v1387_v45, %s3918_s12  ;;  %v1925_v44 = vrot.slane %v1918_v33, %v2559_v8  ;;  %v1911_v45 = vrot.slane %v1904_v38, %v2559_v8  ;;  %v96_v33 = vmul.f32 %v2551_v2, %v94_v21 }
  0x70   :  { %v2911_v47 = vadd.f32 %v96_v33, %v85_v34 }
  0x72   :  { %1464 = vrot.lane.b32.xlu1 %v1461_v49, %s3920_s17  ;;  %1462 = vrot.lane.b32.xlu0 %v1447_v50, %s3920_s17  ;;  %v1985_v49 = vrot.slane %v1978_v41, %v2559_v8  ;;  %v2038_v50 = vrot.slane %v2015_v42, %v2559_v8  ;;  %v700_v41 = vstv %s2829_s2  ;;  %v490_v42 = vstv %s2823_s20  ;;  %s2921_s2 = sld [smem:[#allocation3 + $0x22]] }
  0x73   :  { %v2917_v51 = vmul.f32 %v2575_v13, %v700_v41  ;;  %v2926_v56 = vmul.f32 %v2580_v14, %v700_v41 }
  0x76   :  { %1524 = vrot.lane.b32.xlu1 %v1521_v57, %s3922_s22  ;;  %1522 = vrot.lane.b32.xlu0 %v1507_v60, %s3922_s22  ;;  %v2045_v57 = vrot.slane %v2038_v50, %v2559_v8  ;;  %v2420_v60 = vld [vmem:[%s3914_s4 + $0x37] sm:$0x1]  ;;  %s2904_s4 = sld [smem:[#allocation3 + $0x10]] }
  0x77   :  { %v2195_v6 = vmul.f32 %v2420_v60, %v2602_v20 }
  0x79   :  { %v2218_v15 = vrot.slane %v2195_v6, %v2559_v8  ;;  %v915_v6 = vstv %s2874_s16 }
  0x7a   :  { %1584 = vrot.lane.b32.xlu1 %v1581_v9, %s3924_s26  ;;  %1582 = vrot.lane.b32.xlu0 %v1567_v10, %s3924_s26  ;;  %v2105_v9 = vrot.slane %v2098_v61, %v2559_v8  ;;  %v2091_v10 = vrot.slane %v2084_v62, %v2559_v8  ;;  %v845_v62 = vstv %s2863_s11 }
  0x7e   :  { %1644 = vrot.lane.b32.xlu1 %v1641_v16, %s3926_s14  ;;  %1642 = vrot.lane.b32.xlu0 %v1627_v19, %s3926_s14  ;;  %v89_v16 = vstv %s2782_s28  ;;  %s2844_s28 = sld [smem:[#allocation3 + $0x1a]]  ;;  %v206_v19 = vstv %s2770_s24 }
  0x7f   :  { %v90_v24 = vmul.f32 %v89_v16, %v2546_v0 }
  0x82   :  { %1704 = vrot.lane.b32.xlu1 %v1701_v25, %s3928_s7  ;;  %1702 = vrot.lane.b32.xlu0 %v1687_v26, %s3928_s7  ;;  %v91_v25 = vmul.f32 %v2551_v2, %v89_v16  ;;  %v2225_v26 = vrot.slane %v2218_v15, %v2559_v8  ;;  %v2888_v2 = vadd.f32 %v90_v24, %v83_v29  ;;  %s2896_s7 = sld [smem:[#allocation3 + $0xf]] }
  0x84   :  { %v2890_v39 = vadd.f32 %v91_v25, %v83_v29  ;;  %v664_v50 = vstv %s2844_s28 }
  0x86   :  { %1868 = vrot.lane.b32.xlu1 %v1865_v36, %s3916_s6  ;;  %1866 = vrot.lane.b32.xlu0 %v1851_v37, %s3916_s6  ;;  %s2851_s6 = sld [smem:[#allocation3 + $0x1c]]  ;;  %v167_v36 = vstv %s2802_s15  ;;  %v419_v37 = vstv %s2816_s18  ;;  %s3939_s18 = smov 112  }
  0x8a   :  { %1928 = vrot.lane.b32.xlu1 %v1925_v44, %s3918_s12  ;;  %1926 = vrot.lane.b32.xlu0 %v1911_v45, %s3918_s12  ;;  %s2857_s12 = sld [smem:[#allocation3 + $0xb]]  ;;  %v561_v44 = vstv %s2827_s23  ;;  %v705_v45 = vstv %s2835_s1  ;;  %s2923_s1 = sld [smem:[#allocation3 + $0x11]] }
  0x8b   :  { %s3959_s23 = sld [smem:[#allocation11_spill]] }
  0x8c   :  { %v775_v53 = vstv %s2851_s6 }
  0x8e   :  { %1988 = vrot.lane.b32.xlu1 %v1985_v49, %s3920_s17  ;;  %1986 = vrot.lane.b32.xlu0 %v1971_v52, %s3920_s17  ;;  %s2865_s17 = sld [smem:[#allocation3 + $0xc]]  ;;  %v632_v49 = vstv %s2842_s29  ;;  %v743_v52 = vstv %s2849_s30 }
  0x90   :  { %v813_v59 = vstv %s2857_s12 }
  0x92   :  { %2048 = vrot.lane.b32.xlu1 %v2045_v57, %s3922_s22  ;;  %2046 = vrot.lane.b32.xlu0 %v2031_v58, %s3922_s22  ;;  %s2876_s22 = sld [smem:[#allocation3 + $0xd]]  ;;  %v2929_v57 = vmul.f32 %v2575_v13, %v705_v45  ;;  %v2932_v58 = vmul.f32 %v2580_v14, %v705_v45 }
  0x94   :  { %v883_v13 = vstv %s2865_s17  ;;  %s3961_s17 = smov 80  }
  0x96   :  { %2108 = vrot.lane.b32.xlu1 %v2105_v9, %s3924_s26  ;;  %2106 = vrot.lane.b32.xlu0 %v2091_v10, %s3924_s26  ;;  %s2882_s26 = sld [smem:[#allocation3 + $0x1f]] }
  0x98   :  { %v953_v7 = vstv %s2876_s22  ;;  %s3962_s22 = smov 64  }
  0x9a   :  { %2168 = vrot.lane.b32.xlu1 %v2165_v1, %s3926_s14  ;;  %2166 = vrot.lane.b32.xlu0 %v2151_v17, %s3926_s14  ;;  %s2884_s14 = sld [smem:[#allocation3 + $0xe]] }
  0x9c   :  { %v200_v38 = vpop.permute.xlu1 %199  ;;  %v2886_v0 = vpop.permute.xlu0 %126  ;;  %v985_v9 = vstv %s2882_s26  ;;  %s3963_s26 = smov 48  }
  0x9e   :  { %2228 = vrot.lane.b32.xlu1 %v2225_v26, %s3939_s18  ;;  %2226 = vrot.lane.b32.xlu0 %v2211_v30, %s3939_s18  ;;  %s2935_s18 = sld [smem:[#allocation3 + $0x23]] }
  0xa0   :  { %v271_v54 = vpop.permute.xlu0 %270  ;;  %v202_v55 = vpop.permute.xlu1 %201 }
  0xa1   :  { %v204_v60 = vsel %vm203_vm0, %v200_v38, %v202_v55  ;;  %v205_v61 = vsel %vm203_vm0, %v202_v55, %v200_v38 }
  0xa2   :  { %v207_v63 = vmul.f32 %v206_v19, %v204_v60  ;;  %v208_v14 = vmul.f32 %v206_v19, %v205_v61  ;;  %v239_v3 = vmul.f32 %v238_v22, %v204_v60  ;;  %v240_v4 = vmul.f32 %v238_v22, %v205_v61 }
  0xa4   :  { %v211_v11 = vcombine.low %v207_v63, %v208_v14  ;;  %v243_v15 = vcombine.low %v239_v3, %v240_v4  ;;  %v342_v16 = vpop.permute.xlu0 %341  ;;  %v273_v1 = vpop.permute.xlu1 %272  ;;  %v3955_v12 = vstv %s2935_s18 }
  0xa5   :  { %v275_v19 = vsel %vm274_vm1, %v271_v54, %v273_v1  ;;  %v276_v21 = vsel %vm274_vm1, %v273_v1, %v271_v54 }
  0xa6   :  { %v2965_v25 = vrot.slane %v211_v11, %v2559_v8  ;;  %v2968_v26 = vrot.slane %v243_v15, %v2559_v8  ;;  %v278_v29 = vmul.f32 %v277_v23, %v275_v19  ;;  %v279_v30 = vmul.f32 %v277_v23, %v276_v21 }
  0xa7   :  { %v310_v32 = vmul.f32 %v309_v27, %v275_v19  ;;  %v311_v33 = vmul.f32 %v309_v27, %v276_v21 }
  0xa8   :  { %v219_v41 = vcombine.high %v2965_v25, %v2965_v25  ;;  %v226_v45 = vrot.slane %v2965_v25, %v2559_v8  ;;  %v251_v23 = vcombine.high %v2968_v26, %v2968_v26  ;;  %v344_v54 = vpop.permute.xlu1 %343  ;;  %v129_v55 = vpop.permute.xlu0 %128  ;;  %v282_v61 = vcombine.low %v278_v29, %v279_v30 }
  0xa9   :  { %v314_v63 = vcombine.low %v310_v32, %v311_v33  ;;  %v346_v27 = vsel %vm345_vm2, %v342_v16, %v344_v54  ;;  %v347_v14 = vsel %vm345_vm2, %v344_v54, %v342_v16  ;;  %v258_v4 = vrot.slane %v2968_v26, %v2559_v8 }
  0xaa   :  { %v2994_v3 = vrot.slane %v219_v41, %v2559_v8  ;;  %v349_v11 = vmul.f32 %v348_v28, %v346_v27  ;;  %v350_v15 = vmul.f32 %v348_v28, %v347_v14  ;;  %v3003_v1 = vrot.slane %v282_v61, %v2559_v8 }
  0xab   :  { %v3006_v19 = vrot.slane %v314_v63, %v2559_v8  ;;  %v381_v16 = vmul.f32 %v380_v31, %v346_v27  ;;  %v382_v21 = vmul.f32 %v380_v31, %v347_v14  ;;  %v3013_v29 = vrot.slane %v251_v23, %v2559_v8 }
  0xac   :  { %v353_v30 = vcombine.low %v349_v11, %v350_v15  ;;  %v133_v28 = vsel %vm132_vm3, %v2886_v0, %v129_v55  ;;  %v134_v32 = vsel %vm132_vm3, %v129_v55, %v2886_v0  ;;  %v415_v33 = vpop.permute.xlu1 %414  ;;  %v413_v41 = vpop.permute.xlu0 %412  ;;  %v290_v54 = vcombine.high %v3003_v1, %v3003_v1 }
  0xad   :  { %v297_v31 = vrot.slane %v3003_v1, %v2559_v8  ;;  %v322_v23 = vcombine.high %v3006_v19, %v3006_v19  ;;  %v329_v61 = vrot.slane %v3006_v19, %v2559_v8  ;;  %v385_v27 = vcombine.low %v381_v16, %v382_v21 }
  0xae   :  { %v3030_v63 = vrot.slane %v353_v30, %v2559_v8  ;;  %v136_v0 = vmul.f32 %v135_v35, %v133_v28  ;;  %v137_v55 = vmul.f32 %v135_v35, %v134_v32  ;;  %v304_v14 = vrot.slane %v290_v54, %v2559_v8 }
  0xaf   :  { %v3038_v11 = vrot.slane %v322_v23, %v2559_v8  ;;  %v168_v15 = vmul.f32 %v167_v36, %v133_v28  ;;  %v169_v1 = vmul.f32 %v167_v36, %v134_v32  ;;  %v392_v21 = vrot.slane %v385_v27, %v2559_v8 }
  0xb0   :  { %v361_v19 = vcombine.high %v3030_v63, %v3030_v63  ;;  %v368_v16 = vrot.slane %v3030_v63, %v2559_v8  ;;  %v140_v35 = vcombine.low %v136_v0, %v137_v55  ;;  %v486_v30 = vpop.permute.xlu1 %485  ;;  %v484_v54 = vpop.permute.xlu0 %483  ;;  %v417_v28 = vsel %vm416_vm4, %v413_v41, %v415_v33 }
  0xb1   :  { %v172_v23 = vcombine.low %v168_v15, %v169_v1  ;;  %v418_v36 = vsel %vm416_vm4, %v415_v33, %v413_v41  ;;  %v488_v32 = vsel %vm487_vm5, %v484_v54, %v486_v30  ;;  %v393_v60 = vcombine.high %v392_v21, %v392_v21 }
  0xb2   :  { %v375_v63 = vrot.slane %v361_v19, %v2559_v8  ;;  %v400_v27 = vrot.slane %v392_v21, %v2559_v8  ;;  %v147_v0 = vrot.slane %v140_v35, %v2559_v8  ;;  %v420_v15 = vmul.f32 %v419_v37, %v417_v28 }
  0xb3   :  { %v179_v55 = vrot.slane %v172_v23, %v2559_v8  ;;  %v421_v1 = vmul.f32 %v419_v37, %v418_v36  ;;  %v452_v33 = vmul.f32 %v451_v40, %v417_v28  ;;  %v407_v41 = vrot.slane %v393_v60, %v2559_v8 }
  0xb4   :  { %v148_v38 = vcombine.high %v147_v0, %v147_v0  ;;  %v155_v19 = vrot.slane %v147_v0, %v2559_v8  ;;  %v453_v21 = vmul.f32 %v451_v40, %v418_v36  ;;  %v557_v35 = vpop.permute.xlu1 %556  ;;  %v555_v34 = vpop.permute.xlu0 %554  ;;  %v489_v37 = vsel %vm487_vm5, %v486_v30, %v484_v54 }
  0xb5   :  { %v180_v24 = vcombine.high %v179_v55, %v179_v55  ;;  %v187_v23 = vrot.slane %v179_v55, %v2559_v8  ;;  %v424_v22 = vcombine.low %v420_v15, %v421_v1  ;;  %v491_v17 = vmul.f32 %v490_v42, %v488_v32 }
  0xb6   :  { %v162_v28 = vrot.slane %v148_v38, %v2559_v8  ;;  %v165_v60 = vadd.f32 %v155_v19, %v2888_v2  ;;  %v456_v18 = vcombine.low %v452_v33, %v453_v21  ;;  %v492_v10 = vmul.f32 %v490_v42, %v489_v37 }
  0xb7   :  { %v194_v0 = vrot.slane %v180_v24, %v2559_v8  ;;  %v197_v40 = vadd.f32 %v187_v23, %v2909_v46  ;;  %v431_v36 = vrot.slane %v424_v22, %v2559_v8  ;;  %v523_v2 = vmul.f32 %v522_v43, %v488_v32 }
  0xb8   :  { %v166_v55 = vadd.f32 %v162_v28, %v2890_v39  ;;  %v236_v30 = vadd.f32 %v226_v45, %v165_v60  ;;  %v463_v38 = vrot.slane %v456_v18, %v2559_v8  ;;  %v628_v54 = vpop.permute.xlu1 %627  ;;  %v626_v24 = vpop.permute.xlu0 %625  ;;  %v495_v19 = vcombine.low %v491_v17, %v492_v10 }
  0xb9   :  { %v198_v46 = vadd.f32 %v194_v0, %v2911_v47  ;;  %v268_v42 = vadd.f32 %v258_v4, %v197_v40  ;;  %v432_v39 = vcombine.high %v431_v36, %v431_v36  ;;  %v439_v22 = vrot.slane %v431_v36, %v2559_v8 }
  0xba   :  { %v237_v25 = vadd.f32 %v2994_v3, %v166_v55  ;;  %v307_v45 = vadd.f32 %v297_v31, %v236_v30  ;;  %v464_v18 = vcombine.high %v463_v38, %v463_v38  ;;  %v471_v32 = vrot.slane %v463_v38, %v2559_v8 }
  0xbb   :  { %v269_v15 = vadd.f32 %v3013_v29, %v198_v46  ;;  %v339_v1 = vadd.f32 %v329_v61, %v268_v42  ;;  %v446_v33 = vrot.slane %v432_v39, %v2559_v8  ;;  %v524_v4 = vmul.f32 %v522_v43, %v489_v37 }
  0xbc   :  { %v308_v47 = vadd.f32 %v304_v14, %v237_v25  ;;  %v378_v21 = vadd.f32 %v368_v16, %v307_v45  ;;  %v478_v26 = vrot.slane %v464_v18, %v2559_v8  ;;  %v740_v23 = vpop.permute.xlu1 %739  ;;  %v738_v28 = vpop.permute.xlu0 %737  ;;  %v502_v60 = vrot.slane %v495_v19, %v2559_v8 }
  0xbd   :  { %v340_v3 = vadd.f32 %v3038_v11, %v269_v15  ;;  %v410_v31 = vadd.f32 %v400_v27, %v339_v1  ;;  %v559_v29 = vsel %vm558_vm6, %v555_v34, %v557_v35  ;;  %v527_v17 = vcombine.low %v523_v2, %v524_v4 }
  0xbe   :  { %v379_v61 = vadd.f32 %v375_v63, %v308_v47  ;;  %v449_v10 = vadd.f32 %v439_v22, %v378_v21  ;;  %v560_v14 = vsel %vm558_vm6, %v557_v35, %v555_v34  ;;  %v503_v37 = vcombine.high %v502_v60, %v502_v60 }
  0xbf   :  { %v411_v43 = vadd.f32 %v407_v41, %v340_v3  ;;  %v481_v16 = vadd.f32 %v471_v32, %v410_v31  ;;  %v510_v0 = vrot.slane %v502_v60, %v2559_v8  ;;  %v534_v27 = vrot.slane %v527_v17, %v2559_v8 }
  0xc0   :  { %v450_v11 = vadd.f32 %v446_v33, %v379_v61  ;;  %v562_v40 = vmul.f32 %v561_v44, %v559_v29  ;;  %v563_v36 = vmul.f32 %v561_v44, %v560_v14  ;;  %v3114_v63 = vpop.permute.xlu1 %809  ;;  %v808_v55 = vpop.permute.xlu0 %807  ;;  %v517_v38 = vrot.slane %v503_v37, %v2559_v8 }
  0xc1   :  { %v482_v30 = vadd.f32 %v478_v26, %v411_v43  ;;  %v520_v34 = vadd.f32 %v510_v0, %v449_v10  ;;  %v594_v41 = vmul.f32 %v593_v48, %v559_v29  ;;  %v535_v35 = vcombine.high %v534_v27, %v534_v27 }
  0xc2   :  { %v542_v2 = vrot.slane %v534_v27, %v2559_v8  ;;  %v566_v46 = vcombine.low %v562_v40, %v563_v36  ;;  %v595_v42 = vmul.f32 %v593_v48, %v560_v14  ;;  %v521_v44 = vadd.f32 %v517_v38, %v450_v11 }
  0xc3   :  { %v630_v39 = vsel %vm629_vm7, %v626_v24, %v628_v54  ;;  %v631_v22 = vsel %vm629_vm7, %v628_v54, %v626_v24  ;;  %v741_v25 = vsel %vm132_vm3, %v738_v28, %v740_v23  ;;  %v549_v45 = vrot.slane %v535_v35, %v2559_v8 }
  0xc4   :  { %v552_v18 = vadd.f32 %v542_v2, %v481_v16  ;;  %v573_v32 = vrot.slane %v566_v46, %v2559_v8  ;;  %v598_v15 = vcombine.low %v594_v41, %v595_v42  ;;  %v3130_v1 = vpop.permute.xlu1 %879  ;;  %v3132_v48 = vpop.permute.xlu0 %877  ;;  %v633_v33 = vmul.f32 %v632_v49, %v630_v39 }
  0xc5   :  { %v634_v19 = vmul.f32 %v632_v49, %v631_v22  ;;  %v665_v54 = vmul.f32 %v664_v50, %v630_v39  ;;  %v666_v24 = vmul.f32 %v664_v50, %v631_v22  ;;  %v553_v47 = vadd.f32 %v549_v45, %v482_v30 }
  0xc6   :  { %v574_v21 = vcombine.high %v573_v32, %v573_v32  ;;  %v581_v26 = vrot.slane %v573_v32, %v2559_v8  ;;  %v605_v4 = vrot.slane %v598_v15, %v2559_v8  ;;  %v742_v60 = vsel %vm132_vm3, %v740_v23, %v738_v28 }
  0xc7   :  { %v637_v3 = vcombine.low %v633_v33, %v634_v19  ;;  %v669_v31 = vcombine.low %v665_v54, %v666_v24  ;;  %v744_v49 = vmul.f32 %v743_v52, %v741_v25  ;;  %v745_v37 = vmul.f32 %v743_v52, %v742_v60 }
  0xc8   :  { %v588_v29 = vrot.slane %v574_v21, %v2559_v8  ;;  %v591_v61 = vadd.f32 %v581_v26, %v520_v34  ;;  %v606_v50 = vcombine.high %v605_v4, %v605_v4  ;;  %v613_v10 = vrot.slane %v605_v4, %v2559_v8  ;;  %v3150_v17 = vpop.permute.xlu1 %949  ;;  %v948_v14 = vpop.permute.xlu0 %947 }
  0xc9   :  { %v644_v43 = vrot.slane %v637_v3, %v2559_v8  ;;  %v676_v16 = vrot.slane %v669_v31, %v2559_v8  ;;  %v776_v0 = vmul.f32 %v775_v53, %v741_v25  ;;  %v777_v27 = vmul.f32 %v775_v53, %v742_v60 }
  0xca   :  { %v592_v23 = vadd.f32 %v588_v29, %v521_v44  ;;  %v620_v28 = vrot.slane %v606_v50, %v2559_v8  ;;  %v623_v11 = vadd.f32 %v613_v10, %v552_v18  ;;  %v748_v41 = vcombine.low %v744_v49, %v745_v37 }
  0xcb   :  { %v645_v40 = vcombine.high %v644_v43, %v644_v43  ;;  %v652_v36 = vrot.slane %v644_v43, %v2559_v8  ;;  %v677_v30 = vcombine.high %v676_v16, %v676_v16  ;;  %v684_v38 = vrot.slane %v676_v16, %v2559_v8 }
  0xcc   :  { %v624_v34 = vadd.f32 %v620_v28, %v553_v47  ;;  %v780_v35 = vcombine.low %v776_v0, %v777_v27  ;;  %v811_v52 = vsel %vm203_vm0, %v808_v55, %v3114_v63  ;;  %v3166_v2 = vpop.permute.xlu1 %1019  ;;  %v3168_v46 = vpop.permute.xlu0 %1017  ;;  %v755_v22 = vrot.slane %v748_v41, %v2559_v8 }
  0xcd   :  { %v659_v53 = vrot.slane %v645_v40, %v2559_v8  ;;  %v662_v42 = vadd.f32 %v652_v36, %v591_v61  ;;  %v691_v44 = vrot.slane %v677_v30, %v2559_v8  ;;  %v694_v39 = vadd.f32 %v684_v38, %v623_v11 }
  0xce   :  { %v787_v25 = vrot.slane %v780_v35, %v2559_v8  ;;  %v812_v45 = vsel %vm203_vm0, %v3114_v63, %v808_v55  ;;  %v814_v18 = vmul.f32 %v813_v59, %v811_v52  ;;  %v756_v54 = vcombine.high %v755_v22, %v755_v22 }
  0xcf   :  { %v663_v32 = vadd.f32 %v659_v53, %v592_v23  ;;  %v695_v15 = vadd.f32 %v691_v44, %v624_v34  ;;  %v703_v33 = vadd.f32 %v2917_v51, %v662_v42  ;;  %v708_v19 = vadd.f32 %v2929_v57, %v694_v39 }
  0xd0   :  { %v763_v24 = vrot.slane %v755_v22, %v2559_v8  ;;  %v788_v47 = vcombine.high %v787_v25, %v787_v25  ;;  %v795_v21 = vrot.slane %v787_v25, %v2559_v8  ;;  %v3183_v26 = vpop.permute.xlu1 %1089  ;;  %v3185_v4 = vpop.permute.xlu0 %1087  ;;  %v815_v51 = vmul.f32 %v813_v59, %v812_v45 }
  0xd1   :  { %v704_v63 = vadd.f32 %v2926_v56, %v663_v32  ;;  %v709_v55 = vadd.f32 %v2932_v58, %v695_v15  ;;  %v846_v57 = vmul.f32 %v845_v62, %v811_v52  ;;  %v770_v3 = vrot.slane %v756_v54, %v2559_v8 }
  0xd2   :  { %v773_v31 = vadd.f32 %v763_v24, %v703_v33  ;;  %v802_v60 = vrot.slane %v788_v47, %v2559_v8  ;;  %v805_v49 = vadd.f32 %v795_v21, %v708_v19  ;;  %v818_v29 = vcombine.low %v814_v18, %v815_v51 }
  0xd3   :  { %v847_v61 = vmul.f32 %v845_v62, %v812_v45  ;;  %v881_v56 = vsel %vm274_vm1, %v3132_v48, %v3130_v1  ;;  %v882_v58 = vsel %vm274_vm1, %v3130_v1, %v3132_v48  ;;  %v774_v59 = vadd.f32 %v770_v3, %v704_v63 }
  0xd4   :  { %v806_v50 = vadd.f32 %v802_v60, %v709_v55  ;;  %v884_v10 = vmul.f32 %v883_v13, %v881_v56  ;;  %v885_v43 = vmul.f32 %v883_v13, %v882_v58  ;;  %v3209_v16 = vpop.permute.xlu1 %1159  ;;  %v3211_v62 = vpop.permute.xlu0 %1157  ;;  %v825_v37 = vrot.slane %v818_v29, %v2559_v8 }
  0xd5   :  { %v850_v0 = vcombine.low %v846_v57, %v847_v61  ;;  %v916_v23 = vmul.f32 %v915_v6, %v881_v56  ;;  %v917_v1 = vmul.f32 %v915_v6, %v882_v58  ;;  %v951_v28 = vsel %vm345_vm2, %v948_v14, %v3150_v17 }
  0xd6   :  { %v888_v48 = vcombine.low %v884_v10, %v885_v43  ;;  %v952_v13 = vsel %vm345_vm2, %v3150_v17, %v948_v14  ;;  %v1021_v11 = vsel %vm416_vm4, %v3168_v46, %v3166_v2  ;;  %v826_v27 = vcombine.high %v825_v37, %v825_v37 }
  0xd7   :  { %v833_v40 = vrot.slane %v825_v37, %v2559_v8  ;;  %v857_v36 = vrot.slane %v850_v0, %v2559_v8  ;;  %v920_v6 = vcombine.low %v916_v23, %v917_v1  ;;  %v954_v38 = vmul.f32 %v953_v7, %v951_v28 }
  0xd8   :  { %v895_v30 = vrot.slane %v888_v48, %v2559_v8  ;;  %v955_v34 = vmul.f32 %v953_v7, %v952_v13  ;;  %v986_v17 = vmul.f32 %v985_v9, %v951_v28  ;;  %v3237_v14 = vpop.permute.xlu1 %1229  ;;  %v3239_v41 = vpop.permute.xlu0 %1227  ;;  %v840_v35 = vrot.slane %v826_v27, %v2559_v8 }
  0xd9   :  { %v843_v52 = vadd.f32 %v833_v40, %v773_v31  ;;  %v858_v53 = vcombine.high %v857_v36, %v857_v36  ;;  %v865_v42 = vrot.slane %v857_v36, %v2559_v8  ;;  %v927_v22 = vrot.slane %v920_v6, %v2559_v8 }
  0xda   :  { %v896_v44 = vcombine.high %v895_v30, %v895_v30  ;;  %v903_v39 = vrot.slane %v895_v30, %v2559_v8  ;;  %v958_v25 = vcombine.low %v954_v38, %v955_v34  ;;  %v844_v45 = vadd.f32 %v840_v35, %v774_v59 }
  0xdb   :  { %v872_v7 = vrot.slane %v858_v53, %v2559_v8  ;;  %v875_v18 = vadd.f32 %v865_v42, %v805_v49  ;;  %v987_v32 = vmul.f32 %v985_v9, %v952_v13  ;;  %v928_v19 = vcombine.high %v927_v22, %v927_v22 }
  0xdc   :  { %v910_v15 = vrot.slane %v896_v44, %v2559_v8  ;;  %v913_v33 = vadd.f32 %v903_v39, %v843_v52  ;;  %v935_v54 = vrot.slane %v927_v22, %v2559_v8  ;;  %v3250_v24 = vpop.permute.xlu1 %1344  ;;  %v3252_v47 = vpop.permute.xlu0 %1342  ;;  %v965_v63 = vrot.slane %v958_v25, %v2559_v8 }
  0xdd   :  { %v876_v21 = vadd.f32 %v872_v7, %v806_v50  ;;  %v990_v55 = vcombine.low %v986_v17, %v987_v32  ;;  %v1022_v9 = vsel %vm416_vm4, %v3166_v2, %v3168_v46  ;;  %v942_v57 = vrot.slane %v928_v19, %v2559_v8 }
  0xde   :  { %v914_v51 = vadd.f32 %v910_v15, %v844_v45  ;;  %v945_v3 = vadd.f32 %v935_v54, %v875_v18  ;;  %v3941_v31 = vstv %s2884_s14  ;;  %v966_v49 = vcombine.high %v965_v63, %v965_v63 }
  0xdf   :  { %v1024_v60 = vmul.f32 %v3941_v31, %v1021_v11  ;;  %v973_v29 = vrot.slane %v965_v63, %v2559_v8  ;;  %v997_v61 = vrot.slane %v990_v55, %v2559_v8  ;;  %v3942_v56 = vmov %v3941_v31 }
  0xe0   :  { %v1025_v58 = vmul.f32 %v3942_v56, %v1022_v9  ;;  %v946_v59 = vadd.f32 %v942_v57, %v876_v21  ;;  %v3943_v50 = vstv %s2894_s3  ;;  %v1091_v46 = vsel %vm487_vm5, %v3185_v4, %v3183_v26  ;;  %v3274_v37 = vpop.permute.xlu1 %1404  ;;  %v3276_v0 = vpop.permute.xlu0 %1402 }
  0xe1   :  { %v1056_v10 = vmul.f32 %v3943_v50, %v1021_v11  ;;  %v3944_v43 = vmov %v3943_v50  ;;  %v980_v23 = vrot.slane %v966_v49, %v2559_v8  ;;  %v983_v1 = vadd.f32 %v973_v29, %v913_v33 }
  0xe2   :  { %v1057_v2 = vmul.f32 %v3944_v43, %v1022_v9  ;;  %v998_v48 = vcombine.high %v997_v61, %v997_v61  ;;  %v1005_v28 = vrot.slane %v997_v61, %v2559_v8  ;;  %v1028_v13 = vcombine.low %v1024_v60, %v1025_v58 }
  0xe3   :  { %v1092_v27 = vsel %vm487_vm5, %v3183_v26, %v3185_v4  ;;  %v3945_v40 = vstv %s2896_s7  ;;  %v984_v6 = vadd.f32 %v980_v23, %v914_v51  ;;  %v3947_v53 = vstv %s2902_s5  ;;  %s3957_s7 = sld [smem:[#allocation10_spill]] }
  0xe4   :  { %v1060_v11 = vcombine.low %v1056_v10, %v1057_v2  ;;  %v1094_v36 = vmul.f32 %v3945_v40, %v1091_v46  ;;  %v1012_v30 = vrot.slane %v998_v48, %v2559_v8  ;;  %v1015_v38 = vadd.f32 %v1005_v28, %v945_v3  ;;  %v3295_v22 = vpop.permute.xlu1 %1464  ;;  %v3297_v26 = vpop.permute.xlu0 %1462 }
  0xe5   :  { %v3946_v34 = vmov %v3945_v40  ;;  %v1035_v35 = vrot.slane %v1028_v13, %v2559_v8  ;;  %v1126_v42 = vmul.f32 %v3947_v53, %v1091_v46  ;;  %v3948_v44 = vmov %v3947_v53 }
  0xe6   :  { %v1095_v17 = vmul.f32 %v3946_v34, %v1092_v27  ;;  %v1067_v52 = vrot.slane %v1060_v11, %v2559_v8  ;;  %v1127_v39 = vmul.f32 %v3948_v44, %v1092_v27  ;;  %v1016_v4 = vadd.f32 %v1012_v30, %v946_v59 }
  0xe7   :  { %v1161_v45 = vsel %vm558_vm6, %v3211_v62, %v3209_v16  ;;  %v1162_v7 = vsel %vm558_vm6, %v3209_v16, %v3211_v62  ;;  %v1036_v18 = vcombine.high %v1035_v35, %v1035_v35  ;;  %v1043_v32 = vrot.slane %v1035_v35, %v2559_v8 }
  0xe8   :  { %v1098_v25 = vcombine.low %v1094_v36, %v1095_v17  ;;  %v1068_v15 = vcombine.high %v1067_v52, %v1067_v52  ;;  %v1075_v33 = vrot.slane %v1067_v52, %v2559_v8  ;;  %v1130_v54 = vcombine.low %v1126_v42, %v1127_v39  ;;  %v3316_v3 = vpop.permute.xlu1 %1524  ;;  %v3318_v31 = vpop.permute.xlu0 %1522 }
  0xe9   :  { %v3949_v21 = vstv %s2904_s4  ;;  %v1050_v51 = vrot.slane %v1036_v18, %v2559_v8  ;;  %v1053_v57 = vadd.f32 %v1043_v32, %v983_v1  ;;  %v3951_v59 = vstv %s2921_s2 }
  0xea   :  { %v1105_v19 = vrot.slane %v1098_v25, %v2559_v8  ;;  %v1164_v63 = vmul.f32 %v3949_v21, %v1161_v45  ;;  %v3950_v55 = vmov %v3949_v21  ;;  %v1082_v16 = vrot.slane %v1068_v15, %v2559_v8  ;;  %v1298_v15 = vld [vmem:[%s3957_s7] sm:$0x1] }
  0xeb   :  { %v1165_v9 = vmul.f32 %v3950_v55, %v1162_v7  ;;  %v1085_v62 = vadd.f32 %v1075_v33, %v1015_v38  ;;  %v1137_v29 = vrot.slane %v1130_v54, %v2559_v8  ;;  %v1054_v56 = vadd.f32 %v1050_v51, %v984_v6  ;;  %v1299_v55 = vld [vmem:[%s3957_s7 + $0x20] sm:$0x1]  ;;  %v2391_v51 = vld [vmem:[%s3957_s7 + $0x10] sm:$0x1] }
  0xec   :  { %v1106_v60 = vcombine.high %v1105_v19, %v1105_v19  ;;  %v1113_v49 = vrot.slane %v1105_v19, %v2559_v8  ;;  %v1086_v58 = vadd.f32 %v1082_v16, %v1016_v4  ;;  %v1196_v50 = vmul.f32 %v3951_v59, %v1161_v45  ;;  %v3337_v27 = vpop.permute.xlu1 %1584  ;;  %v3339_v40 = vpop.permute.xlu0 %1582 }
  0xed   :  { %v1168_v61 = vcombine.low %v1164_v63, %v1165_v9  ;;  %v3952_v10 = vmov %v3951_v59  ;;  %v1138_v23 = vcombine.high %v1137_v29, %v1137_v29  ;;  %v1145_v1 = vrot.slane %v1137_v29, %v2559_v8  ;;  %v1728_v9 = vld [vmem:[%s3957_s7 + $0x8] sm:$0x1] }
  0xee   :  { %v1197_v43 = vmul.f32 %v3952_v10, %v1162_v7  ;;  %v1120_v2 = vrot.slane %v1106_v60, %v2559_v8  ;;  %v1123_v46 = vadd.f32 %v1113_v49, %v1053_v57  ;;  %v1231_v13 = vsel %vm629_vm7, %v3239_v41, %v3237_v14  ;;  %v2392_v57 = vld [vmem:[%s3957_s7 + $0x30] sm:$0x1] }
  0xef   :  { %v1175_v48 = vrot.slane %v1168_v61, %v2559_v8  ;;  %v1232_v11 = vsel %vm629_vm7, %v3237_v14, %v3239_v41  ;;  %v1152_v6 = vrot.slane %v1138_v23, %v2559_v8  ;;  %v1155_v30 = vadd.f32 %v1145_v1, %v1085_v62 }
  0xf0   :  { %v1200_v28 = vcombine.low %v1196_v50, %v1197_v43  ;;  %v1124_v36 = vadd.f32 %v1120_v2, %v1054_v56  ;;  %v3953_v38 = vstv %s2923_s1  ;;  %v1266_v14 = vmul.f32 %v3955_v12, %v1231_v13  ;;  %v3354_v18 = vpop.permute.xlu1 %1644  ;;  %v3356_v32 = vpop.permute.xlu0 %1642  ;;  %v1729_v56 = vld [vmem:[%s3957_s7 + $0x28] sm:$0x1]  ;;  %s3960_s1 = smov 96  }
  0xf1   :  { %v1234_v34 = vmul.f32 %v3953_v38, %v1231_v13  ;;  %v1176_v17 = vcombine.high %v1175_v48, %v1175_v48  ;;  %v1183_v35 = vrot.slane %v1175_v48, %v2559_v8  ;;  %v3954_v53 = vmov %v3953_v38  ;;  %v2424_v48 = vld [vmem:[%s3957_s7 + $0x38] sm:$0x1] }
  0xf2   :  { %v1207_v52 = vrot.slane %v1200_v28, %v2559_v8  ;;  %v1235_v42 = vmul.f32 %v3954_v53, %v1232_v11  ;;  %v1156_v44 = vadd.f32 %v1152_v6, %v1086_v58  ;;  %v3956_v41 = vmov %v3955_v12  ;;  %v2423_v58 = vld [vmem:[%s3957_s7 + $0x18] sm:$0x1] }
  0xf3   :  { %v1267_v39 = vmul.f32 %v3956_v41, %v1232_v11  ;;  %v1190_v4 = vrot.slane %v1176_v17, %v2559_v8  ;;  %v1193_v25 = vadd.f32 %v1183_v35, %v1123_v46  ;;  %v1301_v49 = vmul.f32 %v2602_v20, %v1298_v15 }
  0xf4   :  { %v1208_v45 = vcombine.high %v1207_v52, %v1207_v52  ;;  %v1215_v7 = vrot.slane %v1207_v52, %v2559_v8  ;;  %v1238_v33 = vcombine.low %v1234_v34, %v1235_v42  ;;  %v3377_v29 = vpop.permute.xlu1 %1704  ;;  %v3379_v61 = vpop.permute.xlu0 %1702  ;;  %v1302_v2 = vmul.f32 %v2602_v20, %v1299_v55 }
  0xf5   :  { %v1270_v19 = vcombine.low %v1266_v14, %v1267_v39  ;;  %v1194_v54 = vadd.f32 %v1190_v4, %v1124_v36  ;;  %v1730_v46 = vmul.f32 %v1728_v9, %v2602_v20  ;;  %v1825_v23 = vmul.f32 %v2391_v51, %v2602_v20 }
  0xf6   :  { %v1222_v21 = vrot.slane %v1208_v45, %v2559_v8  ;;  %v1225_v63 = vadd.f32 %v1215_v7, %v1155_v30  ;;  %v1245_v16 = vrot.slane %v1238_v33, %v2559_v8  ;;  %v1826_v1 = vmul.f32 %v2392_v57, %v2602_v20 }
  0xf7   :  { %v1277_v62 = vrot.slane %v1270_v19, %v2559_v8  ;;  %v1731_v6 = vmul.f32 %v1729_v56, %v2602_v20  ;;  %v2254_v30 = vmul.f32 %v2423_v58, %v2602_v20 }
  0xf8   :  { %v1226_v60 = vadd.f32 %v1222_v21, %v1156_v44  ;;  %v1246_v59 = vcombine.high %v1245_v16, %v1245_v16  ;;  %v1253_v50 = vrot.slane %v1245_v16, %v2559_v8  ;;  %v3404_v38 = vpop.permute.xlu1 %1868  ;;  %v3406_v34 = vpop.permute.xlu0 %1866  ;;  %v3496_v16 = vsub.s32 0, %v2554_v5 }
  0xf9   :  { %v1278_v10 = vcombine.high %v1277_v62, %v1277_v62  ;;  %v1285_v43 = vrot.slane %v1277_v62, %v2559_v8 }
  0xfa   :  { %v1260_v28 = vrot.slane %v1246_v59, %v2559_v8  ;;  %v3397_v13 = vadd.f32 %v1253_v50, %v1193_v25 }
  0xfb   :  { %v1292_v11 = vrot.slane %v1278_v10, %v2559_v8  ;;  %v3400_v36 = vadd.f32 %v1285_v43, %v1225_v63  ;;  %v2255_v8 = vmul.f32 %v2424_v48, %v2602_v20 }
  0xfc   :  { %v3408_v17 = vadd.f32 %v1260_v28, %v1194_v54  ;;  %v1303_v52 = vadd.f32 %v1301_v49, %v3397_v13  ;;  %v1734_v53 = vrot.slane %v3397_v13, 1  ;;  %1746 = vrot.lane.b32.xlu0 %v3397_v13, %s3958_s19  ;;  %v3433_v45 = vpop.permute.xlu1 %1928  ;;  %v3435_v7 = vpop.permute.xlu0 %1926  ;;  %v1348_v62 = vadd.f32 %v3252_v47, %v3397_v13 }
  0xfd   :  { %v3410_v35 = vadd.f32 %v1292_v11, %v1226_v60  ;;  %v1827_v42 = vadd.f32 %v1825_v23, %v3400_v36  ;;  %v2258_v44 = vrot.slane %v3400_v36, 1  ;;  %v1408_v59 = vadd.f32 %v3276_v0, %v3397_v13 }
  0xfe   :  { %v1304_v12 = vadd.f32 %v1302_v2, %v3408_v17  ;;  %1306 = vst.msk [vmem:[%s3959_s23] sm:$0x1] %vm1305_vm8, %v1303_v52  ;;  %v1735_v14 = vrot.slane %v3408_v17, 1  ;;  %v1738_v41 = vadd.f32 %v1734_v53, %v1730_v46  ;;  %1748 = vrot.lane.b32.xlu1 %v3408_v17, %s3958_s19  ;;  %v1355_v5 = vrot.slane %v1348_v62, %v3496_v16  ;;  %v1758_v62 = vld [vmem:[%s3957_s7 + $0xa] sm:$0x1] }
  0xff   :  { %v1828_v39 = vadd.f32 %v1826_v1, %v3410_v35  ;;  %2393 = vst.msk [vmem:[%s3959_s23 + $0x10] sm:$0x1] %vm1305_vm8, %v1827_v42  ;;  %v2259_v4 = vrot.slane %v3410_v35, 1  ;;  %v2262_v25 = vadd.f32 %v2258_v44, %v2254_v30  ;;  %v1349_v10 = vadd.f32 %v3250_v24, %v3408_v17 }
 0x100   :  { %1307 = vst.msk [vmem:[%s3959_s23 + $0x20] sm:$0x1] %vm1305_vm8, %v1304_v12  ;;  %v1739_v15 = vadd.f32 %v1735_v14, %v1731_v6  ;;  %1740 = vst.msk [vmem:[%s3959_s23 + $0x8] sm:$0x1] %vm1305_vm8, %v1738_v41  ;;  %1762 = vrot.lane.b32.xlu0 %v3397_v13, %s3960_s1  ;;  %v3465_v19 = vpop.permute.xlu1 %1988  ;;  %v3467_v54 = vpop.permute.xlu0 %1986  ;;  %v1415_v43 = vrot.slane %v1408_v59, %v3496_v16  ;;  %v1468_v2 = vadd.f32 %v3297_v26, %v3397_v13 }
 0x101   :  { %2394 = vst.msk [vmem:[%s3959_s23 + $0x30] sm:$0x1] %vm1305_vm8, %v1828_v39  ;;  %v2263_v33 = vadd.f32 %v2259_v4, %v2255_v8  ;;  %2425 = vst.msk [vmem:[%s3959_s23 + $0x18] sm:$0x1] %vm1305_vm8, %v2262_v25  ;;  %v1359_v0 = vrot.slane %v1349_v10, %v3496_v16  ;;  %v1409_v46 = vadd.f32 %v3274_v37, %v3408_v17 }
 0x102   :  { %1741 = vst.msk [vmem:[%s3959_s23 + $0x28] sm:$0x1] %vm1305_vm8, %v1739_v15  ;;  %1764 = vrot.lane.b32.xlu1 %v3408_v17, %s3960_s1  ;;  %v1475_v23 = vrot.slane %v1468_v2, %v3496_v16  ;;  %v1528_v24 = vadd.f32 %v3318_v31, %v3397_v13  ;;  %v1469_v26 = vadd.f32 %v3295_v22, %v3408_v17 }
 0x103   :  { %2426 = vst.msk [vmem:[%s3959_s23 + $0x38] sm:$0x1] %vm1305_vm8, %v2263_v33  ;;  %v1419_v1 = vrot.slane %v1409_v46, %v3496_v16  ;;  %v1588_v37 = vadd.f32 %v3339_v40, %v3397_v13  ;;  %v1529_v31 = vadd.f32 %v3316_v3, %v3408_v17  ;;  %v1648_v22 = vadd.f32 %v3356_v32, %v3397_v13  ;;  %v1775_v46 = vld [vmem:[%s3957_s7 + $0x2b] sm:$0x1] }
 0x104   :  { %1778 = vrot.lane.b32.xlu0 %v3397_v13, %s3961_s17  ;;  %v3473_v21 = vpop.permute.xlu1 %2048  ;;  %v3475_v63 = vpop.permute.xlu0 %2046  ;;  %v1535_v48 = vrot.slane %v1528_v24, %v3496_v16  ;;  %v1479_v28 = vrot.slane %v1469_v26, %v3496_v16  ;;  %v1589_v40 = vadd.f32 %v3337_v27, %v3408_v17  ;;  %v1708_v3 = vadd.f32 %v3379_v61, %v3397_v13 }
 0x105   :  { %v1595_v11 = vrot.slane %v1588_v37, %v3496_v16  ;;  %v1539_v6 = vrot.slane %v1529_v31, %v3496_v16  ;;  %v1655_v30 = vrot.slane %v1648_v22, %v3496_v16  ;;  %v1649_v32 = vadd.f32 %v3354_v18, %v3408_v17  ;;  %v1791_v22 = vld [vmem:[%s3957_s7 + $0x2c] sm:$0x1] }
 0x106   :  { %1780 = vrot.lane.b32.xlu1 %v3408_v17, %s3961_s17  ;;  %v1599_v52 = vrot.slane %v1589_v40, %v3496_v16  ;;  %v1715_v53 = vrot.slane %v1708_v3, %v3496_v16  ;;  %v1709_v8 = vadd.f32 %v3377_v29, %v3408_v17  ;;  %v1872_v18 = vadd.f32 %v3406_v34, %v3400_v36 }
 0x107   :  { %v1659_v27 = vrot.slane %v1649_v32, %v3496_v16  ;;  %v1873_v29 = vadd.f32 %v3404_v38, %v3410_v35  ;;  %v1933_v34 = vadd.f32 %v3433_v45, %v3410_v35  ;;  %v1992_v44 = vadd.f32 %v3467_v54, %v3400_v36 }
 0x108   :  { %1794 = vrot.lane.b32.xlu0 %v3397_v13, %s3962_s22  ;;  %v3481_v55 = vpop.permute.xlu1 %2108  ;;  %v3483_v9 = vpop.permute.xlu0 %2106  ;;  %v1719_v61 = vrot.slane %v1709_v8, %v3496_v16  ;;  %v1993_v14 = vadd.f32 %v3465_v19, %v3410_v35  ;;  %v2052_v39 = vadd.f32 %v3475_v63, %v3400_v36  ;;  %v2053_v25 = vadd.f32 %v3473_v21, %v3410_v35 }
 0x109   :  { %v1883_v42 = vrot.slane %v1873_v29, %v3496_v16  ;;  %v1943_v12 = vrot.slane %v1933_v34, %v3496_v16  ;;  %v1999_v41 = vrot.slane %v1992_v44, %v3496_v16  ;;  %v2113_v33 = vadd.f32 %v3481_v55, %v3410_v35 }
 0x10a   :  { %1796 = vrot.lane.b32.xlu1 %v3408_v17, %s3962_s22  ;;  %v2003_v4 = vrot.slane %v1993_v14, %v3496_v16  ;;  %v2059_v45 = vrot.slane %v2052_v39, %v3496_v16  ;;  %v2063_v15 = vrot.slane %v2053_v25, %v3496_v16  ;;  %v1760_v59 = vmul.f32 %v1758_v62, %v2602_v20  ;;  %v2428_v14 = vld [vmem:[%s3957_s7 + $0x39] sm:$0x1]  ;;  %v2436_v62 = vld [vmem:[%s3957_s7 + $0x3b] sm:$0x1] }
 0x10b   :  { %v2123_v21 = vrot.slane %v2113_v33, %v3496_v16  ;;  %v1777_v31 = vmul.f32 %v1775_v46, %v2602_v20  ;;  %v2269_v33 = vmul.f32 %v2428_v14, %v2602_v20 }
 0x10c   :  { %1810 = vrot.lane.b32.xlu0 %v3397_v13, %s3963_s26  ;;  %v3489_v51 = vpop.permute.xlu1 %2168  ;;  %v3491_v57 = vpop.permute.xlu0 %2166  ;;  %v1879_v13 = vrot.slane %v1872_v18, %v3496_v16 }
 0x10d   :  { %v2172_v54 = vadd.f32 %v3491_v57, %v3400_v36  ;;  %v2173_v63 = vadd.f32 %v3489_v51, %v3410_v35 }
 0x10e   :  { %1812 = vrot.lane.b32.xlu1 %v3408_v17, %s3963_s26  ;;  %v1932_v17 = vadd.f32 %v3435_v7, %v3400_v36  ;;  %v2112_v7 = vadd.f32 %v3483_v9, %v3400_v36 }
 0x10f   :  { %v2179_v9 = vrot.slane %v2172_v54, %v3496_v16  ;;  %v2183_v55 = vrot.slane %v2173_v63, %v3496_v16  ;;  %v2432_v54 = vld [vmem:[%s3957_s7 + $0x3a] sm:$0x1] }
 0x110   :  { %2270 = vrot.lane.b32.xlu0 %v3400_v36, %s3958_s19  ;;  %v2229_v60 = vpop.permute.xlu1 %2228  ;;  %v2227_v49 = vpop.permute.xlu0 %2226  ;;  %v1939_v38 = vrot.slane %v1932_v17, %v3496_v16  ;;  %v2119_v19 = vrot.slane %v2112_v7, %v3496_v16 }
 0x111   :  { %v3505_v56 = vadd.f32 %v2229_v60, %v3410_v35  ;;  %v3508_v58 = vadd.f32 %v2227_v49, %v3400_v36 }
 0x112   :  { %2272 = vrot.lane.b32.xlu1 %v3410_v35, %s3958_s19 }
 0x113   :  { %v2243_v47 = vrot.slane %v3505_v56, %v3496_v16  ;;  %v2239_v50 = vrot.slane %v3508_v58, %v3496_v16  ;;  %v1759_v56 = vld [vmem:[%s3957_s7 + $0x2a] sm:$0x1] }
 0x114   :  { %2286 = vrot.lane.b32.xlu0 %v3400_v36, %s3960_s1  ;;  %v1761_v2 = vmul.f32 %v1759_v56, %v2602_v20 }
 0x116   :  { %2288 = vrot.lane.b32.xlu1 %v3410_v35, %s3960_s1 }
 0x118   :  { %1360 = vrot.lane.b32.xlu0 %v1355_v5, %s3958_s19 }
 0x11a   :  { %2304 = vrot.lane.b32.xlu1 %v3410_v35, %s3961_s17 }
 0x11c   :  { %1420 = vrot.lane.b32.xlu0 %v1415_v43, %s3960_s1 }
 0x11e   :  { %1362 = vrot.lane.b32.xlu1 %v1359_v0, %s3958_s19 }
 0x120   :  { %1480 = vrot.lane.b32.xlu0 %v1475_v23, %s3961_s17 }
 0x122   :  { %1422 = vrot.lane.b32.xlu1 %v1419_v1, %s3960_s1 }
 0x124   :  { %1540 = vrot.lane.b32.xlu0 %v1535_v48, %s3962_s22  ;;  %v1790_v48 = vld [vmem:[%s3957_s7 + $0xc] sm:$0x1] }
 0x126   :  { %1482 = vrot.lane.b32.xlu1 %v1479_v28, %s3961_s17 }
 0x128   :  { %1600 = vrot.lane.b32.xlu0 %v1595_v11, %s3963_s26 }
 0x12a   :  { %1542 = vrot.lane.b32.xlu1 %v1539_v6, %s3962_s22 }
 0x12c   :  { %1660 = vrot.lane.b32.xlu0 %v1655_v30, %s3964_s25  ;;  %v1792_v30 = vmul.f32 %v1790_v48, %v2602_v20 }
 0x12e   :  { %1602 = vrot.lane.b32.xlu1 %v1599_v52, %s3963_s26  ;;  %v1806_v52 = vld [vmem:[%s3957_s7 + $0xd] sm:$0x1] }
 0x130   :  { %1720 = vrot.lane.b32.xlu0 %v1715_v53, %s3965_s27 }
 0x132   :  { %1662 = vrot.lane.b32.xlu1 %v1659_v27, %s3964_s25  ;;  %v1793_v27 = vmul.f32 %v1791_v22, %v2602_v20  ;;  %v2439_v22 = vld [vmem:[%s3957_s7 + $0x1c] sm:$0x1] }
 0x134   :  { %2302 = vrot.lane.b32.xlu0 %v3400_v36, %s3961_s17 }
 0x136   :  { %1722 = vrot.lane.b32.xlu1 %v1719_v61, %s3965_s27  ;;  %v1807_v61 = vld [vmem:[%s3957_s7 + $0x2d] sm:$0x1] }
 0x137   :  { %v1809_v44 = vmul.f32 %v1807_v61, %v2602_v20 }
 0x138   :  { %2318 = vrot.lane.b32.xlu0 %v3400_v36, %s3962_s22 }
 0x13a   :  { %2320 = vrot.lane.b32.xlu1 %v3410_v35, %s3962_s22 }
 0x13c   :  { %2334 = vrot.lane.b32.xlu0 %v3400_v36, %s3963_s26  ;;  %v1742_v36 = vld [vmem:[%s3957_s7 + $0x9] sm:$0x1] }
 0x13d   :  { %v1744_v51 = vmul.f32 %v1742_v36, %v2602_v20 }
 0x13e   :  { %2336 = vrot.lane.b32.xlu1 %v3410_v35, %s3963_s26  ;;  %v1743_v35 = vld [vmem:[%s3957_s7 + $0x29] sm:$0x1] }
 0x13f   :  { %v1745_v49 = vmul.f32 %v1743_v35, %v2602_v20 }
 0x140   :  { %1884 = vrot.lane.b32.xlu0 %v1879_v13, %s3958_s19  ;;  %v1808_v13 = vmul.f32 %v1806_v52, %v2602_v20  ;;  %v2316_v52 = vmul.f32 %v2439_v22, %v2602_v20 }
 0x142   :  { %1886 = vrot.lane.b32.xlu1 %v1883_v42, %s3958_s19  ;;  %v2427_v42 = vld [vmem:[%s3957_s7 + $0x19] sm:$0x1] }
 0x144   :  { %1944 = vrot.lane.b32.xlu0 %v1939_v38, %s3960_s1 }
 0x146   :  { %1946 = vrot.lane.b32.xlu1 %v1943_v12, %s3960_s1 }
 0x148   :  { %2004 = vrot.lane.b32.xlu0 %v1999_v41, %s3961_s17 }
 0x14a   :  { %2006 = vrot.lane.b32.xlu1 %v2003_v4, %s3961_s17  ;;  %v2268_v4 = vmul.f32 %v2427_v42, %v2602_v20 }
 0x14c   :  { %2064 = vrot.lane.b32.xlu0 %v2059_v45, %s3962_s22  ;;  %v2431_v45 = vld [vmem:[%s3957_s7 + $0x1a] sm:$0x1] }
 0x14e   :  { %2066 = vrot.lane.b32.xlu1 %v2063_v15, %s3962_s22 }
 0x150   :  { %2124 = vrot.lane.b32.xlu0 %v2119_v19, %s3963_s26 }
 0x152   :  { %2126 = vrot.lane.b32.xlu1 %v2123_v21, %s3963_s26 }
 0x154   :  { %2184 = vrot.lane.b32.xlu0 %v2179_v9, %s3964_s25  ;;  %v2284_v9 = vmul.f32 %v2431_v45, %v2602_v20 }
 0x156   :  { %2186 = vrot.lane.b32.xlu1 %v2183_v55, %s3964_s25 }
 0x158   :  { %2244 = vrot.lane.b32.xlu0 %v2239_v50, %s3965_s27  ;;  %v1774_v50 = vld [vmem:[%s3957_s7 + $0xb] sm:$0x1] }
 0x159   :  { %v1776_v1 = vmul.f32 %v1774_v50, %v2602_v20 }
 0x15a   :  { %2246 = vrot.lane.b32.xlu1 %v2243_v47, %s3965_s27 }
 0x16e   :  { %v1747_v57 = vpop.permute.xlu0 %1746 }
 0x16f   :  { %v1750_v60 = vrot.slane %v1747_v57, 1 }
 0x170   :  { %v1749_v16 = vpop.permute.xlu1 %1748 }
 0x171   :  { %v1754_v58 = vadd.f32 %v1750_v60, %v1744_v51  ;;  %v1751_v5 = vrot.slane %v1749_v16, 1  ;;  %v2285_v51 = vmul.f32 %v2432_v54, %v2602_v20 }
 0x172   :  { %v1763_v47 = vpop.permute.xlu0 %1762 }
 0x173   :  { %1756 = vst.msk [vmem:[%s3959_s23 + $0x9] sm:$0x1] %vm1305_vm8, %v1754_v58  ;;  %v1755_v10 = vadd.f32 %v1751_v5, %v1745_v49  ;;  %v1766_v43 = vrot.slane %v1763_v47, 1  ;;  %v2301_v58 = vmul.f32 %v2436_v62, %v2602_v20 }
 0x174   :  { %v1765_v0 = vpop.permute.xlu1 %1764 }
 0x175   :  { %1757 = vst.msk [vmem:[%s3959_s23 + $0x29] sm:$0x1] %vm1305_vm8, %v1755_v10  ;;  %v1770_v23 = vadd.f32 %v1766_v43, %v1760_v59  ;;  %v1767_v24 = vrot.slane %v1765_v0, 1 }
 0x176   :  { %v1779_v26 = vpop.permute.xlu0 %1778 }
 0x177   :  { %1772 = vst.msk [vmem:[%s3959_s23 + $0xa] sm:$0x1] %vm1305_vm8, %v1770_v23  ;;  %v1771_v37 = vadd.f32 %v1767_v24, %v1761_v2  ;;  %v1782_v28 = vrot.slane %v1779_v26, 1 }
 0x178   :  { %v1781_v11 = vpop.permute.xlu1 %1780 }
 0x179   :  { %1773 = vst.msk [vmem:[%s3959_s23 + $0x2a] sm:$0x1] %vm1305_vm8, %v1771_v37  ;;  %v1786_v6 = vadd.f32 %v1782_v28, %v1776_v1  ;;  %v1783_v40 = vrot.slane %v1781_v11, 1  ;;  %v2435_v37 = vld [vmem:[%s3957_s7 + $0x1b] sm:$0x1] }
 0x17a   :  { %v1795_v3 = vpop.permute.xlu0 %1794 }
 0x17b   :  { %1788 = vst.msk [vmem:[%s3959_s23 + $0xb] sm:$0x1] %vm1305_vm8, %v1786_v6  ;;  %v1787_v32 = vadd.f32 %v1783_v40, %v1777_v31  ;;  %v1798_v53 = vrot.slane %v1795_v3, 1  ;;  %v2300_v31 = vmul.f32 %v2435_v37, %v2602_v20 }
 0x17c   :  { %v1797_v8 = vpop.permute.xlu1 %1796 }
 0x17d   :  { %1789 = vst.msk [vmem:[%s3959_s23 + $0x2b] sm:$0x1] %vm1305_vm8, %v1787_v32  ;;  %v1802_v18 = vadd.f32 %v1798_v53, %v1792_v30  ;;  %v1799_v29 = vrot.slane %v1797_v8, 1  ;;  %v2440_v30 = vld [vmem:[%s3957_s7 + $0x3c] sm:$0x1] }
 0x17e   :  { %v1811_v17 = vpop.permute.xlu0 %1810  ;;  %v2443_v53 = vld [vmem:[%s3957_s7 + $0x1d] sm:$0x1]  ;;  %v2317_v8 = vmul.f32 %v2440_v30, %v2602_v20 }
 0x17f   :  { %1804 = vst.msk [vmem:[%s3959_s23 + $0xc] sm:$0x1] %vm1305_vm8, %v1802_v18  ;;  %v1803_v34 = vadd.f32 %v1799_v29, %v1793_v27  ;;  %v1814_v38 = vrot.slane %v1811_v17, 1  ;;  %v2444_v18 = vld [vmem:[%s3957_s7 + $0x3d] sm:$0x1]  ;;  %v2332_v17 = vmul.f32 %v2443_v53, %v2602_v20 }
 0x180   :  { %v1813_v12 = vpop.permute.xlu1 %1812 }
 0x181   :  { %1805 = vst.msk [vmem:[%s3959_s23 + $0x2c] sm:$0x1] %vm1305_vm8, %v1803_v34  ;;  %v1818_v41 = vadd.f32 %v1814_v38, %v1808_v13  ;;  %v1815_v39 = vrot.slane %v1813_v12, 1 }
 0x182   :  { %v2271_v25 = vpop.permute.xlu0 %2270 }
 0x183   :  { %1820 = vst.msk [vmem:[%s3959_s23 + $0xd] sm:$0x1] %vm1305_vm8, %v1818_v41  ;;  %v1819_v7 = vadd.f32 %v1815_v39, %v1809_v44  ;;  %v2274_v15 = vrot.slane %v2271_v25, 1  ;;  %v2333_v44 = vmul.f32 %v2444_v18, %v2602_v20 }
 0x184   :  { %v2273_v19 = vpop.permute.xlu1 %2272 }
 0x185   :  { %1821 = vst.msk [vmem:[%s3959_s23 + $0x2d] sm:$0x1] %vm1305_vm8, %v1819_v7  ;;  %v2278_v21 = vadd.f32 %v2274_v15, %v2268_v4  ;;  %v2275_v63 = vrot.slane %v2273_v19, 1 }
 0x186   :  { %v2287_v55 = vpop.permute.xlu0 %2286 }
 0x187   :  { %2429 = vst.msk [vmem:[%s3959_s23 + $0x19] sm:$0x1] %vm1305_vm8, %v2278_v21  ;;  %v2279_v36 = vadd.f32 %v2275_v63, %v2269_v33  ;;  %v2290_v35 = vrot.slane %v2287_v55, 1 }
 0x188   :  { %v2289_v57 = vpop.permute.xlu1 %2288 }
 0x189   :  { %2430 = vst.msk [vmem:[%s3959_s23 + $0x39] sm:$0x1] %vm1305_vm8, %v2279_v36  ;;  %v2294_v60 = vadd.f32 %v2290_v35, %v2284_v9  ;;  %v2291_v49 = vrot.slane %v2289_v57, 1 }
 0x18a   :  { %v1361_v16 = vpop.permute.xlu0 %1360 }
 0x18b   :  { %2433 = vst.msk [vmem:[%s3959_s23 + $0x1a] sm:$0x1] %vm1305_vm8, %v2294_v60  ;;  %v2295_v56 = vadd.f32 %v2291_v49, %v2285_v51  ;;  %1366 = vst.msk [vmem:[%s3959_s23 + $0x1] sm:$0x1] %vm1305_vm8, %v1361_v16 }
 0x18c   :  { %v2305_v5 = vpop.permute.xlu1 %2304 }
 0x18d   :  { %2434 = vst.msk [vmem:[%s3959_s23 + $0x3a] sm:$0x1] %vm1305_vm8, %v2295_v56  ;;  %v2307_v59 = vrot.slane %v2305_v5, 1 }
 0x18e   :  { %v1421_v47 = vpop.permute.xlu0 %1420 }
 0x18f   :  { %v2311_v50 = vadd.f32 %v2307_v59, %v2301_v58  ;;  %1426 = vst.msk [vmem:[%s3959_s23 + $0x2] sm:$0x1] %vm1305_vm8, %v1421_v47 }
 0x190   :  { %v1363_v10 = vpop.permute.xlu1 %1362 }
 0x191   :  { %2438 = vst.msk [vmem:[%s3959_s23 + $0x3b] sm:$0x1] %vm1305_vm8, %v2311_v50  ;;  %1367 = vst.msk [vmem:[%s3959_s23 + $0x21] sm:$0x1] %vm1305_vm8, %v1363_v10 }
 0x192   :  { %v1481_v43 = vpop.permute.xlu0 %1480 }
 0x193   :  { %1486 = vst.msk [vmem:[%s3959_s23 + $0x3] sm:$0x1] %vm1305_vm8, %v1481_v43 }
 0x194   :  { %v1423_v2 = vpop.permute.xlu1 %1422 }
 0x195   :  { %1427 = vst.msk [vmem:[%s3959_s23 + $0x22] sm:$0x1] %vm1305_vm8, %v1423_v2 }
 0x196   :  { %v1541_v0 = vpop.permute.xlu0 %1540 }
 0x197   :  { %1546 = vst.msk [vmem:[%s3959_s23 + $0x4] sm:$0x1] %vm1305_vm8, %v1541_v0 }
 0x198   :  { %v1483_v46 = vpop.permute.xlu1 %1482 }
 0x199   :  { %1487 = vst.msk [vmem:[%s3959_s23 + $0x23] sm:$0x1] %vm1305_vm8, %v1483_v46 }
 0x19a   :  { %v1601_v23 = vpop.permute.xlu0 %1600 }
 0x19b   :  { %1606 = vst.msk [vmem:[%s3959_s23 + $0x5] sm:$0x1] %vm1305_vm8, %v1601_v23 }
 0x19c   :  { %v1543_v24 = vpop.permute.xlu1 %1542 }
 0x19d   :  { %1547 = vst.msk [vmem:[%s3959_s23 + $0x24] sm:$0x1] %vm1305_vm8, %v1543_v24 }
 0x19e   :  { %v1661_v1 = vpop.permute.xlu0 %1660 }
 0x19f   :  { %1666 = vst.msk [vmem:[%s3959_s23 + $0x6] sm:$0x1] %vm1305_vm8, %v1661_v1 }
 0x1a0   :  { %v1603_v26 = vpop.permute.xlu1 %1602 }
 0x1a1   :  { %1607 = vst.msk [vmem:[%s3959_s23 + $0x25] sm:$0x1] %vm1305_vm8, %v1603_v26 }
 0x1a2   :  { %v1721_v48 = vpop.permute.xlu0 %1720 }
 0x1a3   :  { %1726 = vst.msk [vmem:[%s3959_s23 + $0x7] sm:$0x1] %vm1305_vm8, %v1721_v48 }
 0x1a4   :  { %v1663_v28 = vpop.permute.xlu1 %1662 }
 0x1a5   :  { %1667 = vst.msk [vmem:[%s3959_s23 + $0x26] sm:$0x1] %vm1305_vm8, %v1663_v28 }
 0x1a6   :  { %v2303_v11 = vpop.permute.xlu0 %2302 }
 0x1a7   :  { %v2306_v6 = vrot.slane %v2303_v11, 1 }
 0x1a8   :  { %v1723_v40 = vpop.permute.xlu1 %1722 }
 0x1a9   :  { %v2310_v3 = vadd.f32 %v2306_v6, %v2300_v31  ;;  %1727 = vst.msk [vmem:[%s3959_s23 + $0x27] sm:$0x1] %vm1305_vm8, %v1723_v40 }
 0x1aa   :  { %v2319_v32 = vpop.permute.xlu0 %2318 }
 0x1ab   :  { %2437 = vst.msk [vmem:[%s3959_s23 + $0x1b] sm:$0x1] %vm1305_vm8, %v2310_v3  ;;  %v2322_v27 = vrot.slane %v2319_v32, 1 }
 0x1ac   :  { %v2321_v61 = vpop.permute.xlu1 %2320 }
 0x1ad   :  { %v2326_v29 = vadd.f32 %v2322_v27, %v2316_v52  ;;  %v2323_v13 = vrot.slane %v2321_v61, 1 }
 0x1ae   :  { %v2335_v42 = vpop.permute.xlu0 %2334 }
 0x1af   :  { %2441 = vst.msk [vmem:[%s3959_s23 + $0x1c] sm:$0x1] %vm1305_vm8, %v2326_v29  ;;  %v2327_v34 = vadd.f32 %v2323_v13, %v2317_v8  ;;  %v2338_v38 = vrot.slane %v2335_v42, 1 }
 0x1b0   :  { %v2337_v12 = vpop.permute.xlu1 %2336 }
 0x1b1   :  { %2442 = vst.msk [vmem:[%s3959_s23 + $0x3c] sm:$0x1] %vm1305_vm8, %v2327_v34  ;;  %v2342_v14 = vadd.f32 %v2338_v38, %v2332_v17  ;;  %v2339_v41 = vrot.slane %v2337_v12, 1 }
 0x1b2   :  { %v1885_v39 = vpop.permute.xlu0 %1884 }
 0x1b3   :  { %2445 = vst.msk [vmem:[%s3959_s23 + $0x1d] sm:$0x1] %vm1305_vm8, %v2342_v14  ;;  %v2343_v4 = vadd.f32 %v2339_v41, %v2333_v44  ;;  %2397 = vst.msk [vmem:[%s3959_s23 + $0x11] sm:$0x1] %vm1305_vm8, %v1885_v39 }
 0x1b4   :  { %v1887_v20 = vpop.permute.xlu1 %1886 }
 0x1b5   :  { %2446 = vst.msk [vmem:[%s3959_s23 + $0x3d] sm:$0x1] %vm1305_vm8, %v2343_v4  ;;  %2398 = vst.msk [vmem:[%s3959_s23 + $0x31] sm:$0x1] %vm1305_vm8, %v1887_v20 }
 0x1b6   :  { %v1945_v25 = vpop.permute.xlu0 %1944 }
 0x1b7   :  { %2401 = vst.msk [vmem:[%s3959_s23 + $0x12] sm:$0x1] %vm1305_vm8, %v1945_v25 }
 0x1b8   :  { %v1947_v45 = vpop.permute.xlu1 %1946 }
 0x1b9   :  { %2402 = vst.msk [vmem:[%s3959_s23 + $0x32] sm:$0x1] %vm1305_vm8, %v1947_v45 }
 0x1ba   :  { %v2005_v7 = vpop.permute.xlu0 %2004 }
 0x1bb   :  { %2405 = vst.msk [vmem:[%s3959_s23 + $0x13] sm:$0x1] %vm1305_vm8, %v2005_v7 }
 0x1bc   :  { %v2007_v15 = vpop.permute.xlu1 %2006 }
 0x1bd   :  { %2406 = vst.msk [vmem:[%s3959_s23 + $0x33] sm:$0x1] %vm1305_vm8, %v2007_v15 }
 0x1be   :  { %v2065_v33 = vpop.permute.xlu0 %2064 }
 0x1bf   :  { %2409 = vst.msk [vmem:[%s3959_s23 + $0x14] sm:$0x1] %vm1305_vm8, %v2065_v33 }
 0x1c0   :  { %v2067_v19 = vpop.permute.xlu1 %2066 }
 0x1c1   :  { %2410 = vst.msk [vmem:[%s3959_s23 + $0x34] sm:$0x1] %vm1305_vm8, %v2067_v19 }
 0x1c2   :  { %v2125_v54 = vpop.permute.xlu0 %2124 }
 0x1c3   :  { %2413 = vst.msk [vmem:[%s3959_s23 + $0x15] sm:$0x1] %vm1305_vm8, %v2125_v54 }
 0x1c4   :  { %v2127_v21 = vpop.permute.xlu1 %2126 }
 0x1c5   :  { %2414 = vst.msk [vmem:[%s3959_s23 + $0x35] sm:$0x1] %vm1305_vm8, %v2127_v21 }
 0x1c6   :  { %v2185_v63 = vpop.permute.xlu0 %2184 }
 0x1c7   :  { %2417 = vst.msk [vmem:[%s3959_s23 + $0x16] sm:$0x1] %vm1305_vm8, %v2185_v63 }
 0x1c8   :  { %v2187_v9 = vpop.permute.xlu1 %2186 }
 0x1c9   :  { %2418 = vst.msk [vmem:[%s3959_s23 + $0x36] sm:$0x1] %vm1305_vm8, %v2187_v9 }
 0x1ca   :  { %v2245_v55 = vpop.permute.xlu0 %2244 }
 0x1cb   :  { %2421 = vst.msk [vmem:[%s3959_s23 + $0x17] sm:$0x1] %vm1305_vm8, %v2245_v55 }
 0x1cc   :  { %v2247_v36 = vpop.permute.xlu1 %2246 }
 0x1cd   :  { %2422 = vst.msk [vmem:[%s3959_s23 + $0x37] sm:$0x1] %vm1305_vm8, %v2247_v36 }
 0x1ce   :  { %2350 = vsyncpa [#allocation4], 1 }
 0x1cf   :  { %2351 = vsyncpa [#allocation6], 1 }

</bundles_post_ra>
